<compile_context>
chip_gen: v7x
topology: tpu7x:2x2x1
jax: 0.10.0
libtpu: 0.0.40
codegen_flags: <defaults>
</compile_context>

<pallas_src>
import functools

import jax
import jax.numpy as jnp
from jax import lax
from jax.experimental import pallas as pl
from jax.experimental.pallas import tpu as pltpu

HIGHEST = jax.lax.Precision.HIGHEST


# ----------------------------------------------------------------------------
# Fused encoder kernel: all layers + all timesteps inside one grid step
# (grid axis = batch element, marked "parallel").
# ----------------------------------------------------------------------------
def _encoder_kernel(T, N, U, K, L, activation, n_buf, *refs):
    f32, bf16 = jnp.float32, jnp.bfloat16
    act = jnp.tanh if activation == "tanh" else (lambda v: jnp.maximum(v, 0.0))

    x_ref, h0_ref, scat_ref = refs[0], refs[1], refs[2]
    w_refs = refs[3:3 + 6 * L]
    out_hid_ref = refs[3 + 6 * L]
    out_seq_ref = refs[3 + 6 * L + 1]
    scratch = refs[3 + 6 * L + 2:]
    bufs = list(scratch[:n_buf])
    pxg_ref, pxc_ref = scratch[n_buf], scratch[n_buf + 1]

    # Stacked Chebyshev operators [T_1(S); ...; T_K(S)] in f32, loaded once.
    scat = scat_ref[...]                                     # (K*N, N)

    def diffuse_feat(z):
        # z: (N, F) f32 -> (N, (K+1)*F) f32 = [z | T_1(S) z | ... | T_K(S) z].
        # One MXU push for all K diffusion steps; f32 to avoid bf16 error
        # compounding through the recurrence.
        rz = jnp.dot(scat, z, preferred_element_type=f32)    # (K*N, F)
        parts = [z] + [rz[m * N:(m + 1) * N, :] for m in range(K)]
        return jnp.concatenate(parts, axis=-1)

    src_ref = x_ref
    for l in range(L):
        # Per-layer weight / bias loads hoisted out of both time loops.
        wxg = w_refs[6 * l + 0][...]                         # (M*Din_l, 2U) bf16
        wxc = w_refs[6 * l + 1][...]                         # (M*Din_l,  U) bf16
        whg = w_refs[6 * l + 2][...]                         # (M*U,     2U) bf16
        whc = w_refs[6 * l + 3][...]                         # (M*U,      U) bf16
        bg = w_refs[6 * l + 4][...]                          # (1, 2U) f32
        bc = w_refs[6 * l + 5][...]                          # (1,  U) f32
        dst_ref = out_seq_ref if l == L - 1 else bufs[l % n_buf]

        # ---- Phase 1: recurrence-independent x-side, hoisted out of loop ----
        def precompute(t, carry):
            featx = diffuse_feat(src_ref[t]).astype(bf16)    # (N, M*Din_l)
            pxg_ref[t] = jnp.dot(featx, wxg, preferred_element_type=f32) + bg
            pxc_ref[t] = jnp.dot(featx, wxc, preferred_element_type=f32) + bc
            return carry

        lax.fori_loop(0, T, precompute, 0)

        # ---- Phase 2: serial GRU recurrence (h-dependent work only) ----
        def step(t, h):
            feat_h = diffuse_feat(h).astype(bf16)            # (N, M*U)
            g = jax.nn.sigmoid(
                pxg_ref[t] + jnp.dot(feat_h, whg, preferred_element_type=f32))
            r = g[:, :U]
            u = g[:, U:]
            feat_c = diffuse_feat(r * h).astype(bf16)        # (N, M*U)
            c = act(
                pxc_ref[t] + jnp.dot(feat_c, whc, preferred_element_type=f32))
            h_new = u * h + (1.0 - u) * c                    # f32 element-wise
            dst_ref[t] = h_new
            return h_new

        h_last = lax.fori_loop(0, T, step, h0_ref[l])
        out_hid_ref[l] = h_last
        src_ref = dst_ref


def _full_spec(shape):
    nd = len(shape)
    return pl.BlockSpec(shape, lambda b, _nd=nd: (0,) * _nd)


def dcrnn_encoder_forward(inputs, init_hidden, support, kparams, *, K, U,
                          activation="tanh"):
    """DCRNNEncoder.forward.

    inputs      : (T, B, N, Din) f32
    init_hidden : (L, B, N*U)    f32   (encoder.init_hidden -> zeros)
    support     : (N, N)         f32   single 'laplacian'-type dense support
    Returns (output_hidden (L, B, N*U), output_seq (T, B, N*U)).
    """
    assert K >= 1, "kernel expects max_diffusion_step >= 1"
    T, B, N, Din = inputs.shape
    L = len(kparams)
    assert N % 8 == 0, "per-batch node block must be sublane aligned"
    # TODO(synk): pad N up to a multiple of 8 for graphs with odd node counts.

    # Host-side stacked Chebyshev operators [T_1(S); ...; T_K(S)], kept in f32.
    S = support.astype(jnp.float32)
    cheb = [S]
    t_km2, t_km1 = jnp.eye(N, dtype=jnp.float32), S
    for _ in range(2, K + 1):
        t_k = 2.0 * jnp.dot(S, t_km1, precision=HIGHEST) - t_km2
        cheb.append(t_k)
        t_km2, t_km1 = t_km1, t_k
    scat = jnp.concatenate(cheb, axis=0)                     # (K*N, N) f32

    x = inputs.reshape(T, B * N, Din)          # rows are (b, n), b-major
    h0 = init_hidden.reshape(L, B * N, U)

    ops = [x, h0, scat]
    in_specs = [
        pl.BlockSpec((T, N, Din), lambda b: (0, b, 0)),
        pl.BlockSpec((L, N, U), lambda b: (0, b, 0)),
        _full_spec(scat.shape),
    ]
    for p in kparams:
        for name in ("wxg", "wxc", "whg", "whc", "bg", "bc"):
            a = p[name]
            ops.append(a)
            in_specs.append(_full_spec(a.shape))

    n_buf = min(2, L - 1)   # ping-pong buffers for intermediate layer outputs
    kernel = functools.partial(_encoder_kernel, T, N, U, K, L, activation,
                               n_buf)
    out_hidden, out_seq = pl.pallas_call(
        kernel,
        out_shape=(jax.ShapeDtypeStruct((L, B * N, U), jnp.float32),
                   jax.ShapeDtypeStruct((T, B * N, U), jnp.float32)),
        grid=(B,),
        in_specs=in_specs,
        out_specs=(pl.BlockSpec((L, N, U), lambda b: (0, b, 0)),
                   pl.BlockSpec((T, N, U), lambda b: (0, b, 0))),
        scratch_shapes=(
            [pltpu.VMEM((T, N, U), jnp.float32) for _ in range(n_buf)]
            + [pltpu.VMEM((T, N, 2 * U), jnp.float32),   # hoisted x-side gate
               pltpu.VMEM((T, N, U), jnp.float32)]),     # hoisted x-side cand
        compiler_params=pltpu.CompilerParams(
            dimension_semantics=("parallel",),
            vmem_limit_bytes=32 * 1024 * 1024),
    )(*ops)

    return out_hidden.reshape(L, B, N * U), out_seq.reshape(T, B, N * U)


# ----------------------------------------------------------------------------
# Pure-JAX reference (mirrors the PyTorch module exactly, f32 HIGHEST)
# ----------------------------------------------------------------------------
def _dconv_ref(S, inputs, state, W, b, K):
    B, N, _ = inputs.shape
    x0 = jnp.concatenate([inputs, state], axis=2)              # (B, N, F)
    mats = [x0]
    if K > 0:
        x1 = jnp.einsum("ij,bjf->bif", S, x0, precision=HIGHEST)
        mats.append(x1)
        xm2, xm1 = x0, x1
        for _ in range(2, K + 1):
            x2 = 2.0 * jnp.einsum("ij,bjf->bif", S, xm1, precision=HIGHEST) - xm2
            mats.append(x2)
            xm2, xm1 = xm1, x2
    M = K + 1
    F = x0.shape[-1]
    x = jnp.stack(mats, axis=1)                                # (B, M, N, F)
    x = jnp.transpose(x, (0, 2, 3, 1))                         # (B, N, F, M)
    x = x.reshape(B * N, F * M)                                # torch row order
    out = jnp.dot(x, W, precision=HIGHEST) + b
    return out.reshape(B, N, -1)


def dcrnn_encoder_ref(inputs, init_hidden, support, params, *, K, U,
                      activation="tanh"):
    T, B, N, _ = inputs.shape
    L = len(params)
    act = jnp.tanh if activation == "tanh" else (lambda v: jnp.maximum(v, 0.0))
    cur = inputs
    h0 = init_hidden.reshape(L, B, N, U)
    hiddens = []
    for l, p in enumerate(params):
        h = h0[l]
        outs = []
        for t in range(T):
            gate = jax.nn.sigmoid(
                _dconv_ref(support, cur[t], h, p["wg_full"], p["bg_vec"], K))
            r, u = gate[..., :U], gate[..., U:]
            c = act(_dconv_ref(support, cur[t], r * h, p["wc_full"],
                               p["bc_vec"], K))
            h = u * h + (1.0 - u) * c
            outs.append(h)
        cur = jnp.stack(outs, axis=0)
        hiddens.append(h)
    out_hidden = jnp.stack(hiddens, axis=0).reshape(L, B, N * U)
    out_seq = cur.reshape(T, B, N * U)
    return out_hidden, out_seq


# ----------------------------------------------------------------------------
# Parameter init (torch layout) and rearrangement into the kernel layout
# ----------------------------------------------------------------------------
def init_params(key, *, U, Din, K, L):
    """Per-layer torch-layout DiffusionGraphConv weights of shape
    ((Din_l+U)*M, O) with torch's (feature-major, matrix-minor) row ordering,
    plus zero-initialized biases (matching nn.init.constant_(..., 0.0))."""
    M = K + 1
    params = []
    keys = jax.random.split(key, 2 * L)
    din = Din
    for l in range(L):
        F = din + U
        std_g = 1.414 * (2.0 / (F * M + 2 * U)) ** 0.5   # xavier_normal, gain=1.414
        std_c = 1.414 * (2.0 / (F * M + U)) ** 0.5
        wg = std_g * jax.random.normal(keys[2 * l], (F * M, 2 * U), jnp.float32)
        wc = std_c * jax.random.normal(keys[2 * l + 1], (F * M, U), jnp.float32)
        params.append(dict(
            wg_full=wg, wc_full=wc,
            bg_vec=jnp.zeros((2 * U,), jnp.float32),
            bc_vec=jnp.zeros((U,), jnp.float32),
            din=din))
        din = U
    return params


def prepare_kernel_params(params, *, U, K):
    """Rearrange torch-layout weights into the fused-kernel layout
    (matrix-major, feature-minor rows so one matmul covers all K+1 matrices):
       wxg : (M*Din_l, 2U)   x-side gate projection
       wxc : (M*Din_l,  U)   x-side candidate projection
       whg : (M*U,     2U)   h-side gate projection
       whc : (M*U,      U)   (r*h)-side candidate projection
    bf16 weights (matmul inputs), f32 biases."""
    M = K + 1
    kparams = []
    for p in params:
        din = p["din"]
        F = din + U

        def split_xh(w_full, out_dim):
            w = w_full.reshape(F, M, out_dim)        # torch row index = f*M + m
            w = jnp.transpose(w, (1, 0, 2))          # (M, F, out_dim)
            wx = w[:, :din, :].reshape(M * din, out_dim)
            wh = w[:, din:, :].reshape(M * U, out_dim)
            return wx, wh

        wxg, whg = split_xh(p["wg_full"], 2 * U)
        wxc, whc = split_xh(p["wc_full"], U)
        kparams.append(dict(
            wxg=wxg.astype(jnp.bfloat16),
            wxc=wxc.astype(jnp.bfloat16),
            whg=whg.astype(jnp.bfloat16),
            whc=whc.astype(jnp.bfloat16),
            bg=p["bg_vec"].reshape(1, 2 * U).astype(jnp.float32),
            bc=p["bc_vec"].reshape(1, U).astype(jnp.float32),
        ))
    return kparams


if __name__ == "__main__":
    # input_dim=4, hid_dim=16, num_nodes=8, max_diffusion_step=2,
    # num_rnn_layers=2, seq=8, batch=2, filter_type='laplacian',
    # dcgru_activation='tanh'
    B, T, N, Din, U, K, L = 2, 8, 8, 4, 16, 2, 2

    key = jax.random.PRNGKey(0)
    k_in, k_sup, k_par = jax.random.split(key, 3)

    inputs = jax.random.normal(k_in, (T, B, N, Din), jnp.float32)
    init_hidden = jnp.zeros((L, B, N * U), jnp.float32)   # encoder.init_hidden

    # Deterministic scaled-laplacian-style single support matrix.
    A = jax.random.uniform(k_sup, (N, N), jnp.float32)
    A = 0.5 * (A + A.T)
    deg = A.sum(axis=1)
    lap = jnp.eye(N, dtype=jnp.float32) - A / jnp.sqrt(deg[:, None] * deg[None, :])
    support = (lap - jnp.eye(N, dtype=jnp.float32)).astype(jnp.float32)

    params = init_params(k_par, U=U, Din=Din, K=K, L=L)
    kparams = prepare_kernel_params(params, U=U, K=K)

    out_hidden, out_seq = dcrnn_encoder_forward(
        inputs, init_hidden, support, kparams, K=K, U=U, activation="tanh")
    out_hidden, out_seq = jax.block_until_ready((out_hidden, out_seq))

    ref_hidden, ref_seq = dcrnn_encoder_ref(
        inputs, init_hidden, support, params, K=K, U=U, activation="tanh")

    assert out_hidden.shape == (L, B, N * U), out_hidden.shape
    assert out_seq.shape == (T, B, N * U), out_seq.shape
    assert bool(jnp.all(jnp.isfinite(out_hidden)))
    assert bool(jnp.all(jnp.isfinite(out_seq)))
    assert bool(jnp.allclose(out_hidden, ref_hidden, atol=5e-2, rtol=5e-2))
    assert bool(jnp.allclose(out_seq, ref_seq, atol=5e-2, rtol=5e-2))
    print("KERNEL_OK")
</pallas_src>

<mosaic_0001>
module attributes {stable_mosaic.version = 11 : i64} {
  func.func @_encoder_kernel(%arg0: i32, %arg1: memref<8x8x4xf32, #tpu.memory_space<vmem>>, %arg2: memref<2x8x16xf32, #tpu.memory_space<vmem>>, %arg3: memref<16x8xf32, #tpu.memory_space<vmem>>, %arg4: memref<12x32xbf16, #tpu.memory_space<vmem>>, %arg5: memref<12x16xbf16, #tpu.memory_space<vmem>>, %arg6: memref<48x32xbf16, #tpu.memory_space<vmem>>, %arg7: memref<48x16xbf16, #tpu.memory_space<vmem>>, %arg8: memref<1x32xf32, #tpu.memory_space<vmem>>, %arg9: memref<1x16xf32, #tpu.memory_space<vmem>>, %arg10: memref<48x32xbf16, #tpu.memory_space<vmem>>, %arg11: memref<48x16xbf16, #tpu.memory_space<vmem>>, %arg12: memref<48x32xbf16, #tpu.memory_space<vmem>>, %arg13: memref<48x16xbf16, #tpu.memory_space<vmem>>, %arg14: memref<1x32xf32, #tpu.memory_space<vmem>>, %arg15: memref<1x16xf32, #tpu.memory_space<vmem>>, %arg16: memref<2x8x16xf32, #tpu.memory_space<vmem>>, %arg17: memref<8x8x16xf32, #tpu.memory_space<vmem>>, %arg18: memref<8x8x16xf32, #tpu.memory_space<vmem>>, %arg19: memref<8x8x32xf32, #tpu.memory_space<vmem>>, %arg20: memref<8x8x16xf32, #tpu.memory_space<vmem>>) attributes {dimension_semantics = [#tpu.dimension_semantics<parallel>], iteration_bounds = array<i64: 2>, scalar_prefetch = 0 : i64, scratch_operands = 3 : i64, tpu.core_type = #tpu.core_type<tc>, window_params = [{transform_indices = @transform_0, window_bounds = array<i64: 8, 8, 4>}, {transform_indices = @transform_1, window_bounds = array<i64: 2, 8, 16>}, {pipeline_mode = #tpu.pipeline_mode<synchronous>, transform_indices = @transform_2, window_bounds = array<i64: 16, 8>}, {pipeline_mode = #tpu.pipeline_mode<synchronous>, transform_indices = @transform_3, window_bounds = array<i64: 12, 32>}, {pipeline_mode = #tpu.pipeline_mode<synchronous>, transform_indices = @transform_4, window_bounds = array<i64: 12, 16>}, {pipeline_mode = #tpu.pipeline_mode<synchronous>, transform_indices = @transform_5, window_bounds = array<i64: 48, 32>}, {pipeline_mode = #tpu.pipeline_mode<synchronous>, transform_indices = @transform_6, window_bounds = array<i64: 48, 16>}, {pipeline_mode = #tpu.pipeline_mode<synchronous>, transform_indices = @transform_7, window_bounds = array<i64: 1, 32>}, {pipeline_mode = #tpu.pipeline_mode<synchronous>, transform_indices = @transform_8, window_bounds = array<i64: 1, 16>}, {pipeline_mode = #tpu.pipeline_mode<synchronous>, transform_indices = @transform_9, window_bounds = array<i64: 48, 32>}, {pipeline_mode = #tpu.pipeline_mode<synchronous>, transform_indices = @transform_10, window_bounds = array<i64: 48, 16>}, {pipeline_mode = #tpu.pipeline_mode<synchronous>, transform_indices = @transform_11, window_bounds = array<i64: 48, 32>}, {pipeline_mode = #tpu.pipeline_mode<synchronous>, transform_indices = @transform_12, window_bounds = array<i64: 48, 16>}, {pipeline_mode = #tpu.pipeline_mode<synchronous>, transform_indices = @transform_13, window_bounds = array<i64: 1, 32>}, {pipeline_mode = #tpu.pipeline_mode<synchronous>, transform_indices = @transform_14, window_bounds = array<i64: 1, 16>}, {transform_indices = @transform_15, window_bounds = array<i64: 2, 8, 16>}, {transform_indices = @transform_16, window_bounds = array<i64: 8, 8, 16>}]} {
    %c0 = arith.constant 0 : index
    %c0_0 = arith.constant 0 : index
    %0 = vector.load %arg3[%c0, %c0_0] : memref<16x8xf32, #tpu.memory_space<vmem>>, vector<16x8xf32>
    %c0_1 = arith.constant 0 : index
    %c0_2 = arith.constant 0 : index
    %1 = vector.load %arg4[%c0_1, %c0_2] : memref<12x32xbf16, #tpu.memory_space<vmem>>, vector<12x32xbf16>
    %c0_3 = arith.constant 0 : index
    %c0_4 = arith.constant 0 : index
    %2 = vector.load %arg5[%c0_3, %c0_4] : memref<12x16xbf16, #tpu.memory_space<vmem>>, vector<12x16xbf16>
    %c0_5 = arith.constant 0 : index
    %c0_6 = arith.constant 0 : index
    %3 = vector.load %arg6[%c0_5, %c0_6] : memref<48x32xbf16, #tpu.memory_space<vmem>>, vector<48x32xbf16>
    %c0_7 = arith.constant 0 : index
    %c0_8 = arith.constant 0 : index
    %4 = vector.load %arg7[%c0_7, %c0_8] : memref<48x16xbf16, #tpu.memory_space<vmem>>, vector<48x16xbf16>
    %c0_9 = arith.constant 0 : index
    %c0_10 = arith.constant 0 : index
    %5 = vector.load %arg8[%c0_9, %c0_10] : memref<1x32xf32, #tpu.memory_space<vmem>>, vector<1x32xf32>
    %c0_11 = arith.constant 0 : index
    %c0_12 = arith.constant 0 : index
    %6 = vector.load %arg9[%c0_11, %c0_12] : memref<1x16xf32, #tpu.memory_space<vmem>>, vector<1x16xf32>
    %c0_i32 = arith.constant 0 : i32
    %c8_i32 = arith.constant 8 : i32
    %7 = arith.addi %c0_i32, %c8_i32 : i32
    %c1_i32 = arith.constant 1 : i32
    scf.for %arg21 = %c0_i32 to %7 step %c1_i32  : i32 {
      %29 = arith.index_cast %arg21 : i32 to index
      %c0_49 = arith.constant 0 : index
      %c0_50 = arith.constant 0 : index
      %30 = vector.load %arg1[%29, %c0_49, %c0_50] : memref<8x8x4xf32, #tpu.memory_space<vmem>>, vector<1x8x4xf32>
      %31 = vector.shape_cast %30 : vector<1x8x4xf32> to vector<8x4xf32>
      %cst = arith.constant dense<0.000000e+00> : vector<16x4xf32>
      %32 = tpu.matmul %0, %31, %cst {dimension_numbers = #tpu.dot_dimension_numbers<[1], [0], [0], [1], [0, 0, 1, 1], [], []>} : vector<16x8xf32>, vector<8x4xf32>, vector<16x4xf32> -> vector<16x4xf32>
      %33 = vector.extract_strided_slice %32 {offsets = [0, 0], sizes = [8, 4], strides = [1, 1]} : vector<16x4xf32> to vector<8x4xf32>
      %34 = vector.extract_strided_slice %32 {offsets = [8, 0], sizes = [8, 4], strides = [1, 1]} : vector<16x4xf32> to vector<8x4xf32>
      %35 = tpu.concatenate %31, %33, %34 in 1 : vector<8x4xf32>, vector<8x4xf32>, vector<8x4xf32> -> vector<8x12xf32>
      %36 = arith.truncf %35 : vector<8x12xf32> to vector<8x12xbf16>
      %cst_51 = arith.constant dense<0.000000e+00> : vector<8x32xf32>
      %37 = tpu.matmul %36, %1, %cst_51 {dimension_numbers = #tpu.dot_dimension_numbers<[1], [0], [0], [1], [0, 0, 1, 1], [], []>} : vector<8x12xbf16>, vector<12x32xbf16>, vector<8x32xf32> -> vector<8x32xf32>
      %38 = vector.broadcast %5 : vector<1x32xf32> to vector<8x32xf32>
      %39 = arith.addf %37, %38 : vector<8x32xf32>
      %40 = arith.index_cast %arg21 : i32 to index
      %c0_52 = arith.constant 0 : index
      %c0_53 = arith.constant 0 : index
      %41 = vector.load %arg19[%40, %c0_52, %c0_53] : memref<8x8x32xf32, #tpu.memory_space<vmem>>, vector<1x8x32xf32>
      %42 = vector.shape_cast %41 : vector<1x8x32xf32> to vector<8x32xf32>
      %43 = vector.shape_cast %39 : vector<8x32xf32> to vector<1x8x32xf32>
      tpu.vector_store %arg19[%40, %c0_52, %c0_53], %43 {strides = array<i32>} : memref<8x8x32xf32, #tpu.memory_space<vmem>>, vector<1x8x32xf32>,
      %cst_54 = arith.constant dense<0.000000e+00> : vector<8x16xf32>
      %44 = tpu.matmul %36, %2, %cst_54 {dimension_numbers = #tpu.dot_dimension_numbers<[1], [0], [0], [1], [0, 0, 1, 1], [], []>} : vector<8x12xbf16>, vector<12x16xbf16>, vector<8x16xf32> -> vector<8x16xf32>
      %45 = vector.broadcast %6 : vector<1x16xf32> to vector<8x16xf32>
      %46 = arith.addf %44, %45 : vector<8x16xf32>
      %47 = arith.index_cast %arg21 : i32 to index
      %c0_55 = arith.constant 0 : index
      %c0_56 = arith.constant 0 : index
      %48 = vector.load %arg20[%47, %c0_55, %c0_56] : memref<8x8x16xf32, #tpu.memory_space<vmem>>, vector<1x8x16xf32>
      %49 = vector.shape_cast %48 : vector<1x8x16xf32> to vector<8x16xf32>
      %50 = vector.shape_cast %46 : vector<8x16xf32> to vector<1x8x16xf32>
      tpu.vector_store %arg20[%47, %c0_55, %c0_56], %50 {strides = array<i32>} : memref<8x8x16xf32, #tpu.memory_space<vmem>>, vector<1x8x16xf32>,
    }
    %c8_i32_13 = arith.constant 8 : i32
    %c0_14 = arith.constant 0 : index
    %c0_15 = arith.constant 0 : index
    %c0_16 = arith.constant 0 : index
    %8 = vector.load %arg2[%c0_14, %c0_15, %c0_16] : memref<2x8x16xf32, #tpu.memory_space<vmem>>, vector<1x8x16xf32>
    %9 = vector.shape_cast %8 : vector<1x8x16xf32> to vector<8x16xf32>
    %c0_i32_17 = arith.constant 0 : i32
    %c8_i32_18 = arith.constant 8 : i32
    %10 = arith.addi %c0_i32_17, %c8_i32_18 : i32
    %c1_i32_19 = arith.constant 1 : i32
    %11 = scf.for %arg21 = %c0_i32_17 to %10 step %c1_i32_19 iter_args(%arg22 = %9) -> (vector<8x16xf32>)  : i32 {
      %cst = arith.constant dense<0.000000e+00> : vector<16x16xf32>
      %29 = tpu.matmul %0, %arg22, %cst {dimension_numbers = #tpu.dot_dimension_numbers<[1], [0], [0], [1], [0, 0, 1, 1], [], []>} : vector<16x8xf32>, vector<8x16xf32>, vector<16x16xf32> -> vector<16x16xf32>
      %30 = vector.extract_strided_slice %29 {offsets = [0, 0], sizes = [8, 16], strides = [1, 1]} : vector<16x16xf32> to vector<8x16xf32>
      %31 = vector.extract_strided_slice %29 {offsets = [8, 0], sizes = [8, 16], strides = [1, 1]} : vector<16x16xf32> to vector<8x16xf32>
      %32 = tpu.concatenate %arg22, %30, %31 in 1 : vector<8x16xf32>, vector<8x16xf32>, vector<8x16xf32> -> vector<8x48xf32>
      %33 = arith.truncf %32 : vector<8x48xf32> to vector<8x48xbf16>
      %34 = arith.index_cast %arg21 : i32 to index
      %c0_49 = arith.constant 0 : index
      %c0_50 = arith.constant 0 : index
      %35 = vector.load %arg19[%34, %c0_49, %c0_50] : memref<8x8x32xf32, #tpu.memory_space<vmem>>, vector<1x8x32xf32>
      %36 = vector.shape_cast %35 : vector<1x8x32xf32> to vector<8x32xf32>
      %cst_51 = arith.constant dense<0.000000e+00> : vector<8x32xf32>
      %37 = tpu.matmul %33, %3, %cst_51 {dimension_numbers = #tpu.dot_dimension_numbers<[1], [0], [0], [1], [0, 0, 1, 1], [], []>} : vector<8x48xbf16>, vector<48x32xbf16>, vector<8x32xf32> -> vector<8x32xf32>
      %38 = arith.addf %36, %37 : vector<8x32xf32>
      %39 = arith.negf %38 : vector<8x32xf32>
      %40 = math.exp %39 : vector<8x32xf32>
      %cst_52 = arith.constant 1.000000e+00 : f32
      %41 = vector.broadcast %cst_52 : f32 to vector<8x32xf32>
      %42 = arith.addf %41, %40 : vector<8x32xf32>
      %43 = arith.divf %41, %42 : vector<8x32xf32>
      %44 = vector.extract_strided_slice %43 {offsets = [0, 0], sizes = [8, 16], strides = [1, 1]} : vector<8x32xf32> to vector<8x16xf32>
      %45 = vector.extract_strided_slice %43 {offsets = [0, 16], sizes = [8, 16], strides = [1, 1]} : vector<8x32xf32> to vector<8x16xf32>
      %46 = arith.mulf %44, %arg22 : vector<8x16xf32>
      %cst_53 = arith.constant dense<0.000000e+00> : vector<16x16xf32>
      %47 = tpu.matmul %0, %46, %cst_53 {dimension_numbers = #tpu.dot_dimension_numbers<[1], [0], [0], [1], [0, 0, 1, 1], [], []>} : vector<16x8xf32>, vector<8x16xf32>, vector<16x16xf32> -> vector<16x16xf32>
      %48 = vector.extract_strided_slice %47 {offsets = [0, 0], sizes = [8, 16], strides = [1, 1]} : vector<16x16xf32> to vector<8x16xf32>
      %49 = vector.extract_strided_slice %47 {offsets = [8, 0], sizes = [8, 16], strides = [1, 1]} : vector<16x16xf32> to vector<8x16xf32>
      %50 = tpu.concatenate %46, %48, %49 in 1 : vector<8x16xf32>, vector<8x16xf32>, vector<8x16xf32> -> vector<8x48xf32>
      %51 = arith.truncf %50 : vector<8x48xf32> to vector<8x48xbf16>
      %52 = arith.index_cast %arg21 : i32 to index
      %c0_54 = arith.constant 0 : index
      %c0_55 = arith.constant 0 : index
      %53 = vector.load %arg20[%52, %c0_54, %c0_55] : memref<8x8x16xf32, #tpu.memory_space<vmem>>, vector<1x8x16xf32>
      %54 = vector.shape_cast %53 : vector<1x8x16xf32> to vector<8x16xf32>
      %cst_56 = arith.constant dense<0.000000e+00> : vector<8x16xf32>
      %55 = tpu.matmul %51, %4, %cst_56 {dimension_numbers = #tpu.dot_dimension_numbers<[1], [0], [0], [1], [0, 0, 1, 1], [], []>} : vector<8x48xbf16>, vector<48x16xbf16>, vector<8x16xf32> -> vector<8x16xf32>
      %56 = arith.addf %54, %55 : vector<8x16xf32>
      %57 = math.tanh %56 : vector<8x16xf32>
      %58 = arith.mulf %45, %arg22 : vector<8x16xf32>
      %cst_57 = arith.constant 1.000000e+00 : f32
      %59 = vector.broadcast %cst_57 : f32 to vector<8x16xf32>
      %60 = arith.subf %59, %45 : vector<8x16xf32>
      %61 = arith.mulf %60, %57 : vector<8x16xf32>
      %62 = arith.addf %58, %61 : vector<8x16xf32>
      %63 = arith.index_cast %arg21 : i32 to index
      %c0_58 = arith.constant 0 : index
      %c0_59 = arith.constant 0 : index
      %64 = vector.load %arg18[%63, %c0_58, %c0_59] : memref<8x8x16xf32, #tpu.memory_space<vmem>>, vector<1x8x16xf32>
      %65 = vector.shape_cast %64 : vector<1x8x16xf32> to vector<8x16xf32>
      %66 = vector.shape_cast %62 : vector<8x16xf32> to vector<1x8x16xf32>
      tpu.vector_store %arg18[%63, %c0_58, %c0_59], %66 {strides = array<i32>} : memref<8x8x16xf32, #tpu.memory_space<vmem>>, vector<1x8x16xf32>,
      scf.yield %62 : vector<8x16xf32>
    }
    %c8_i32_20 = arith.constant 8 : i32
    %c0_21 = arith.constant 0 : index
    %c0_22 = arith.constant 0 : index
    %c0_23 = arith.constant 0 : index
    %12 = vector.load %arg16[%c0_21, %c0_22, %c0_23] : memref<2x8x16xf32, #tpu.memory_space<vmem>>, vector<1x8x16xf32>
    %13 = vector.shape_cast %12 : vector<1x8x16xf32> to vector<8x16xf32>
    %14 = vector.shape_cast %11 : vector<8x16xf32> to vector<1x8x16xf32>
    tpu.vector_store %arg16[%c0_21, %c0_22, %c0_23], %14 {strides = array<i32>} : memref<2x8x16xf32, #tpu.memory_space<vmem>>, vector<1x8x16xf32>,
    %c0_24 = arith.constant 0 : index
    %c0_25 = arith.constant 0 : index
    %15 = vector.load %arg10[%c0_24, %c0_25] : memref<48x32xbf16, #tpu.memory_space<vmem>>, vector<48x32xbf16>
    %c0_26 = arith.constant 0 : index
    %c0_27 = arith.constant 0 : index
    %16 = vector.load %arg11[%c0_26, %c0_27] : memref<48x16xbf16, #tpu.memory_space<vmem>>, vector<48x16xbf16>
    %c0_28 = arith.constant 0 : index
    %c0_29 = arith.constant 0 : index
    %17 = vector.load %arg12[%c0_28, %c0_29] : memref<48x32xbf16, #tpu.memory_space<vmem>>, vector<48x32xbf16>
    %c0_30 = arith.constant 0 : index
    %c0_31 = arith.constant 0 : index
    %18 = vector.load %arg13[%c0_30, %c0_31] : memref<48x16xbf16, #tpu.memory_space<vmem>>, vector<48x16xbf16>
    %c0_32 = arith.constant 0 : index
    %c0_33 = arith.constant 0 : index
    %19 = vector.load %arg14[%c0_32, %c0_33] : memref<1x32xf32, #tpu.memory_space<vmem>>, vector<1x32xf32>
    %c0_34 = arith.constant 0 : index
    %c0_35 = arith.constant 0 : index
    %20 = vector.load %arg15[%c0_34, %c0_35] : memref<1x16xf32, #tpu.memory_space<vmem>>, vector<1x16xf32>
    %c0_i32_36 = arith.constant 0 : i32
    %c8_i32_37 = arith.constant 8 : i32
    %21 = arith.addi %c0_i32_36, %c8_i32_37 : i32
    %c1_i32_38 = arith.constant 1 : i32
    scf.for %arg21 = %c0_i32_36 to %21 step %c1_i32_38  : i32 {
      %29 = arith.index_cast %arg21 : i32 to index
      %c0_49 = arith.constant 0 : index
      %c0_50 = arith.constant 0 : index
      %30 = vector.load %arg18[%29, %c0_49, %c0_50] : memref<8x8x16xf32, #tpu.memory_space<vmem>>, vector<1x8x16xf32>
      %31 = vector.shape_cast %30 : vector<1x8x16xf32> to vector<8x16xf32>
      %cst = arith.constant dense<0.000000e+00> : vector<16x16xf32>
      %32 = tpu.matmul %0, %31, %cst {dimension_numbers = #tpu.dot_dimension_numbers<[1], [0], [0], [1], [0, 0, 1, 1], [], []>} : vector<16x8xf32>, vector<8x16xf32>, vector<16x16xf32> -> vector<16x16xf32>
      %33 = vector.extract_strided_slice %32 {offsets = [0, 0], sizes = [8, 16], strides = [1, 1]} : vector<16x16xf32> to vector<8x16xf32>
      %34 = vector.extract_strided_slice %32 {offsets = [8, 0], sizes = [8, 16], strides = [1, 1]} : vector<16x16xf32> to vector<8x16xf32>
      %35 = tpu.concatenate %31, %33, %34 in 1 : vector<8x16xf32>, vector<8x16xf32>, vector<8x16xf32> -> vector<8x48xf32>
      %36 = arith.truncf %35 : vector<8x48xf32> to vector<8x48xbf16>
      %cst_51 = arith.constant dense<0.000000e+00> : vector<8x32xf32>
      %37 = tpu.matmul %36, %15, %cst_51 {dimension_numbers = #tpu.dot_dimension_numbers<[1], [0], [0], [1], [0, 0, 1, 1], [], []>} : vector<8x48xbf16>, vector<48x32xbf16>, vector<8x32xf32> -> vector<8x32xf32>
      %38 = vector.broadcast %19 : vector<1x32xf32> to vector<8x32xf32>
      %39 = arith.addf %37, %38 : vector<8x32xf32>
      %40 = arith.index_cast %arg21 : i32 to index
      %c0_52 = arith.constant 0 : index
      %c0_53 = arith.constant 0 : index
      %41 = vector.load %arg19[%40, %c0_52, %c0_53] : memref<8x8x32xf32, #tpu.memory_space<vmem>>, vector<1x8x32xf32>
      %42 = vector.shape_cast %41 : vector<1x8x32xf32> to vector<8x32xf32>
      %43 = vector.shape_cast %39 : vector<8x32xf32> to vector<1x8x32xf32>
      tpu.vector_store %arg19[%40, %c0_52, %c0_53], %43 {strides = array<i32>} : memref<8x8x32xf32, #tpu.memory_space<vmem>>, vector<1x8x32xf32>,
      %cst_54 = arith.constant dense<0.000000e+00> : vector<8x16xf32>
      %44 = tpu.matmul %36, %16, %cst_54 {dimension_numbers = #tpu.dot_dimension_numbers<[1], [0], [0], [1], [0, 0, 1, 1], [], []>} : vector<8x48xbf16>, vector<48x16xbf16>, vector<8x16xf32> -> vector<8x16xf32>
      %45 = vector.broadcast %20 : vector<1x16xf32> to vector<8x16xf32>
      %46 = arith.addf %44, %45 : vector<8x16xf32>
      %47 = arith.index_cast %arg21 : i32 to index
      %c0_55 = arith.constant 0 : index
      %c0_56 = arith.constant 0 : index
      %48 = vector.load %arg20[%47, %c0_55, %c0_56] : memref<8x8x16xf32, #tpu.memory_space<vmem>>, vector<1x8x16xf32>
      %49 = vector.shape_cast %48 : vector<1x8x16xf32> to vector<8x16xf32>
      %50 = vector.shape_cast %46 : vector<8x16xf32> to vector<1x8x16xf32>
      tpu.vector_store %arg20[%47, %c0_55, %c0_56], %50 {strides = array<i32>} : memref<8x8x16xf32, #tpu.memory_space<vmem>>, vector<1x8x16xf32>,
    }
    %c8_i32_39 = arith.constant 8 : i32
    %c1 = arith.constant 1 : index
    %c0_40 = arith.constant 0 : index
    %c0_41 = arith.constant 0 : index
    %22 = vector.load %arg2[%c1, %c0_40, %c0_41] : memref<2x8x16xf32, #tpu.memory_space<vmem>>, vector<1x8x16xf32>
    %23 = vector.shape_cast %22 : vector<1x8x16xf32> to vector<8x16xf32>
    %c0_i32_42 = arith.constant 0 : i32
    %c8_i32_43 = arith.constant 8 : i32
    %24 = arith.addi %c0_i32_42, %c8_i32_43 : i32
    %c1_i32_44 = arith.constant 1 : i32
    %25 = scf.for %arg21 = %c0_i32_42 to %24 step %c1_i32_44 iter_args(%arg22 = %23) -> (vector<8x16xf32>)  : i32 {
      %cst = arith.constant dense<0.000000e+00> : vector<16x16xf32>
      %29 = tpu.matmul %0, %arg22, %cst {dimension_numbers = #tpu.dot_dimension_numbers<[1], [0], [0], [1], [0, 0, 1, 1], [], []>} : vector<16x8xf32>, vector<8x16xf32>, vector<16x16xf32> -> vector<16x16xf32>
      %30 = vector.extract_strided_slice %29 {offsets = [0, 0], sizes = [8, 16], strides = [1, 1]} : vector<16x16xf32> to vector<8x16xf32>
      %31 = vector.extract_strided_slice %29 {offsets = [8, 0], sizes = [8, 16], strides = [1, 1]} : vector<16x16xf32> to vector<8x16xf32>
      %32 = tpu.concatenate %arg22, %30, %31 in 1 : vector<8x16xf32>, vector<8x16xf32>, vector<8x16xf32> -> vector<8x48xf32>
      %33 = arith.truncf %32 : vector<8x48xf32> to vector<8x48xbf16>
      %34 = arith.index_cast %arg21 : i32 to index
      %c0_49 = arith.constant 0 : index
      %c0_50 = arith.constant 0 : index
      %35 = vector.load %arg19[%34, %c0_49, %c0_50] : memref<8x8x32xf32, #tpu.memory_space<vmem>>, vector<1x8x32xf32>
      %36 = vector.shape_cast %35 : vector<1x8x32xf32> to vector<8x32xf32>
      %cst_51 = arith.constant dense<0.000000e+00> : vector<8x32xf32>
      %37 = tpu.matmul %33, %17, %cst_51 {dimension_numbers = #tpu.dot_dimension_numbers<[1], [0], [0], [1], [0, 0, 1, 1], [], []>} : vector<8x48xbf16>, vector<48x32xbf16>, vector<8x32xf32> -> vector<8x32xf32>
      %38 = arith.addf %36, %37 : vector<8x32xf32>
      %39 = arith.negf %38 : vector<8x32xf32>
      %40 = math.exp %39 : vector<8x32xf32>
      %cst_52 = arith.constant 1.000000e+00 : f32
      %41 = vector.broadcast %cst_52 : f32 to vector<8x32xf32>
      %42 = arith.addf %41, %40 : vector<8x32xf32>
      %43 = arith.divf %41, %42 : vector<8x32xf32>
      %44 = vector.extract_strided_slice %43 {offsets = [0, 0], sizes = [8, 16], strides = [1, 1]} : vector<8x32xf32> to vector<8x16xf32>
      %45 = vector.extract_strided_slice %43 {offsets = [0, 16], sizes = [8, 16], strides = [1, 1]} : vector<8x32xf32> to vector<8x16xf32>
      %46 = arith.mulf %44, %arg22 : vector<8x16xf32>
      %cst_53 = arith.constant dense<0.000000e+00> : vector<16x16xf32>
      %47 = tpu.matmul %0, %46, %cst_53 {dimension_numbers = #tpu.dot_dimension_numbers<[1], [0], [0], [1], [0, 0, 1, 1], [], []>} : vector<16x8xf32>, vector<8x16xf32>, vector<16x16xf32> -> vector<16x16xf32>
      %48 = vector.extract_strided_slice %47 {offsets = [0, 0], sizes = [8, 16], strides = [1, 1]} : vector<16x16xf32> to vector<8x16xf32>
      %49 = vector.extract_strided_slice %47 {offsets = [8, 0], sizes = [8, 16], strides = [1, 1]} : vector<16x16xf32> to vector<8x16xf32>
      %50 = tpu.concatenate %46, %48, %49 in 1 : vector<8x16xf32>, vector<8x16xf32>, vector<8x16xf32> -> vector<8x48xf32>
      %51 = arith.truncf %50 : vector<8x48xf32> to vector<8x48xbf16>
      %52 = arith.index_cast %arg21 : i32 to index
      %c0_54 = arith.constant 0 : index
      %c0_55 = arith.constant 0 : index
      %53 = vector.load %arg20[%52, %c0_54, %c0_55] : memref<8x8x16xf32, #tpu.memory_space<vmem>>, vector<1x8x16xf32>
      %54 = vector.shape_cast %53 : vector<1x8x16xf32> to vector<8x16xf32>
      %cst_56 = arith.constant dense<0.000000e+00> : vector<8x16xf32>
      %55 = tpu.matmul %51, %18, %cst_56 {dimension_numbers = #tpu.dot_dimension_numbers<[1], [0], [0], [1], [0, 0, 1, 1], [], []>} : vector<8x48xbf16>, vector<48x16xbf16>, vector<8x16xf32> -> vector<8x16xf32>
      %56 = arith.addf %54, %55 : vector<8x16xf32>
      %57 = math.tanh %56 : vector<8x16xf32>
      %58 = arith.mulf %45, %arg22 : vector<8x16xf32>
      %cst_57 = arith.constant 1.000000e+00 : f32
      %59 = vector.broadcast %cst_57 : f32 to vector<8x16xf32>
      %60 = arith.subf %59, %45 : vector<8x16xf32>
      %61 = arith.mulf %60, %57 : vector<8x16xf32>
      %62 = arith.addf %58, %61 : vector<8x16xf32>
      %63 = arith.index_cast %arg21 : i32 to index
      %c0_58 = arith.constant 0 : index
      %c0_59 = arith.constant 0 : index
      %64 = vector.load %arg17[%63, %c0_58, %c0_59] : memref<8x8x16xf32, #tpu.memory_space<vmem>>, vector<1x8x16xf32>
      %65 = vector.shape_cast %64 : vector<1x8x16xf32> to vector<8x16xf32>
      %66 = vector.shape_cast %62 : vector<8x16xf32> to vector<1x8x16xf32>
      tpu.vector_store %arg17[%63, %c0_58, %c0_59], %66 {strides = array<i32>} : memref<8x8x16xf32, #tpu.memory_space<vmem>>, vector<1x8x16xf32>,
      scf.yield %62 : vector<8x16xf32>
    }
    %c8_i32_45 = arith.constant 8 : i32
    %c1_46 = arith.constant 1 : index
    %c0_47 = arith.constant 0 : index
    %c0_48 = arith.constant 0 : index
    %26 = vector.load %arg16[%c1_46, %c0_47, %c0_48] : memref<2x8x16xf32, #tpu.memory_space<vmem>>, vector<1x8x16xf32>
    %27 = vector.shape_cast %26 : vector<1x8x16xf32> to vector<8x16xf32>
    %28 = vector.shape_cast %25 : vector<8x16xf32> to vector<1x8x16xf32>
    tpu.vector_store %arg16[%c1_46, %c0_47, %c0_48], %28 {strides = array<i32>} : memref<2x8x16xf32, #tpu.memory_space<vmem>>, vector<1x8x16xf32>,
    return
  }
  func.func @transform_0(%arg0: i32) -> (i32, i32, i32) {
    %c0_i32 = arith.constant 0 : i32
    %c0_i32_0 = arith.constant 0 : i32
    %c0_i32_1 = arith.constant 0 : i32
    return %c0_i32, %arg0, %c0_i32_0 : i32, i32, i32
  }
  func.func @transform_1(%arg0: i32) -> (i32, i32, i32) {
    %c0_i32 = arith.constant 0 : i32
    %c0_i32_0 = arith.constant 0 : i32
    %c0_i32_1 = arith.constant 0 : i32
    return %c0_i32, %arg0, %c0_i32_0 : i32, i32, i32
  }
  func.func @transform_2(%arg0: i32) -> (i32, i32) {
    %c0_i32 = arith.constant 0 : i32
    %c0_i32_0 = arith.constant 0 : i32
    %c0_i32_1 = arith.constant 0 : i32
    return %c0_i32, %c0_i32_0 : i32, i32
  }
  func.func @transform_3(%arg0: i32) -> (i32, i32) {
    %c0_i32 = arith.constant 0 : i32
    %c0_i32_0 = arith.constant 0 : i32
    %c0_i32_1 = arith.constant 0 : i32
    return %c0_i32, %c0_i32_0 : i32, i32
  }
  func.func @transform_4(%arg0: i32) -> (i32, i32) {
    %c0_i32 = arith.constant 0 : i32
    %c0_i32_0 = arith.constant 0 : i32
    %c0_i32_1 = arith.constant 0 : i32
    return %c0_i32, %c0_i32_0 : i32, i32
  }
  func.func @transform_5(%arg0: i32) -> (i32, i32) {
    %c0_i32 = arith.constant 0 : i32
    %c0_i32_0 = arith.constant 0 : i32
    %c0_i32_1 = arith.constant 0 : i32
    return %c0_i32, %c0_i32_0 : i32, i32
  }
  func.func @transform_6(%arg0: i32) -> (i32, i32) {
    %c0_i32 = arith.constant 0 : i32
    %c0_i32_0 = arith.constant 0 : i32
    %c0_i32_1 = arith.constant 0 : i32
    return %c0_i32, %c0_i32_0 : i32, i32
  }
  func.func @transform_7(%arg0: i32) -> (i32, i32) {
    %c0_i32 = arith.constant 0 : i32
    %c0_i32_0 = arith.constant 0 : i32
    %c0_i32_1 = arith.constant 0 : i32
    return %c0_i32, %c0_i32_0 : i32, i32
  }
  func.func @transform_8(%arg0: i32) -> (i32, i32) {
    %c0_i32 = arith.constant 0 : i32
    %c0_i32_0 = arith.constant 0 : i32
    %c0_i32_1 = arith.constant 0 : i32
    return %c0_i32, %c0_i32_0 : i32, i32
  }
  func.func @transform_9(%arg0: i32) -> (i32, i32) {
    %c0_i32 = arith.constant 0 : i32
    %c0_i32_0 = arith.constant 0 : i32
    %c0_i32_1 = arith.constant 0 : i32
    return %c0_i32, %c0_i32_0 : i32, i32
  }
  func.func @transform_10(%arg0: i32) -> (i32, i32) {
    %c0_i32 = arith.constant 0 : i32
    %c0_i32_0 = arith.constant 0 : i32
    %c0_i32_1 = arith.constant 0 : i32
    return %c0_i32, %c0_i32_0 : i32, i32
  }
  func.func @transform_11(%arg0: i32) -> (i32, i32) {
    %c0_i32 = arith.constant 0 : i32
    %c0_i32_0 = arith.constant 0 : i32
    %c0_i32_1 = arith.constant 0 : i32
    return %c0_i32, %c0_i32_0 : i32, i32
  }
  func.func @transform_12(%arg0: i32) -> (i32, i32) {
    %c0_i32 = arith.constant 0 : i32
    %c0_i32_0 = arith.constant 0 : i32
    %c0_i32_1 = arith.constant 0 : i32
    return %c0_i32, %c0_i32_0 : i32, i32
  }
  func.func @transform_13(%arg0: i32) -> (i32, i32) {
    %c0_i32 = arith.constant 0 : i32
    %c0_i32_0 = arith.constant 0 : i32
    %c0_i32_1 = arith.constant 0 : i32
    return %c0_i32, %c0_i32_0 : i32, i32
  }
  func.func @transform_14(%arg0: i32) -> (i32, i32) {
    %c0_i32 = arith.constant 0 : i32
    %c0_i32_0 = arith.constant 0 : i32
    %c0_i32_1 = arith.constant 0 : i32
    return %c0_i32, %c0_i32_0 : i32, i32
  }
  func.func @transform_15(%arg0: i32) -> (i32, i32, i32) {
    %c0_i32 = arith.constant 0 : i32
    %c0_i32_0 = arith.constant 0 : i32
    %c0_i32_1 = arith.constant 0 : i32
    return %c0_i32, %arg0, %c0_i32_0 : i32, i32, i32
  }
  func.func @transform_16(%arg0: i32) -> (i32, i32, i32) {
    %c0_i32 = arith.constant 0 : i32
    %c0_i32_0 = arith.constant 0 : i32
    %c0_i32_1 = arith.constant 0 : i32
    return %c0_i32, %arg0, %c0_i32_0 : i32, i32, i32
  }
}

</mosaic_0001>

<bundles_post_ra>
// kernel: tpu_custom_call.1
= control target key start
LH: loop header
LB: loop body
LE: loop exit
PB: predicated region body
PF: predicated region fallthrough
CT: control target
= control target key end

     0   :  { %s3236_s0 = inlined_call_operand.vmem [shape: f32[8,16,4], index: 0, kind: input, shape index: {}]   ;;  %s3237_s1 = inlined_call_operand.vmem [shape: f32[2,16,16], index: 1, kind: input, shape index: {}]   ;;  %s3238_s2 = inlined_call_operand.vmem [shape: f32[16,8], index: 2, kind: input, shape index: {}]   ;;  %s3239_s3 = inlined_call_operand.vmem [shape: bf16[12,32], index: 3, kind: input, shape index: {}]   ;;  %s3240_s4 = inlined_call_operand.vmem [shape: bf16[12,16], index: 4, kind: input, shape index: {}]   ;;  %s3241_s5 = inlined_call_operand.vmem [shape: bf16[48,32], index: 5, kind: input, shape index: {}]   ;;  %s3242_s6 = inlined_call_operand.vmem [shape: bf16[48,16], index: 6, kind: input, shape index: {}]   ;;  %s3243_s7 = inlined_call_operand.vmem [shape: f32[1,32], index: 7, kind: input, shape index: {}]   ;;  %s3244_s8 = inlined_call_operand.vmem [shape: f32[1,16], index: 8, kind: input, shape index: {}]   ;;  %s3245_s9 = inlined_call_operand.vmem [shape: bf16[48,32], index: 9, kind: input, shape index: {}]   ;;  %s3246_s10 = inlined_call_operand.vmem [shape: bf16[48,16], index: 10, kind: input, shape index: {}]   ;;  %s3247_s11 = inlined_call_operand.vmem [shape: bf16[48,32], index: 11, kind: input, shape index: {}]   ;;  %s3248_s12 = inlined_call_operand.vmem [shape: bf16[48,16], index: 12, kind: input, shape index: {}]   ;;  %s3249_s13 = inlined_call_operand.vmem [shape: f32[1,32], index: 13, kind: input, shape index: {}]   ;;  %s3250_s14 = inlined_call_operand.vmem [shape: f32[1,16], index: 14, kind: input, shape index: {}]   ;;  %s3251_s15 = inlined_call_operand.hbm [shape: f32[2,16,16], index: 15, kind: output, shape index: {0}]   ;;  %s3252_s16 = inlined_call_operand.hbm [shape: f32[8,16,16], index: 16, kind: output, shape index: {1}]  }
   0x1   :  { %3258 = sst [smem:[#allocation17_spill]] %s3236_s0 }
   0x2   :  { %3259 = sst [smem:[#allocation18_spill]] %s3237_s1 }
   0x3   :  { %3260 = sst [smem:[#allocation19_spill]] %s3238_s2 }
   0x4   :  { %3261 = sst [smem:[#allocation20_spill]] %s3239_s3 }
   0x5   :  { %3262 = sst [smem:[#allocation21_spill]] %s3240_s4 }
   0x6   :  { %3263 = sst [smem:[#allocation22_spill]] %s3241_s5 }
   0x7   :  { %3264 = sst [smem:[#allocation23_spill]] %s3242_s6 }
   0x8   :  { %22 = vsyncpa [#allocation8], 0 }
   0x9   :  { %24 = vsyncpa [#allocation8 + $0x1], 0 }
   0xa   :  { %25 = vsyncpa [#allocation10], 0 }
   0xb   :  { %27 = vsyncpa [#allocation10 + $0x1], 0  ;;  %s2649_s21 = smov 0   ;;  %s2651_s22 = smov 0  }
   0xc   :  { %s2653_s23 = smov 0   ;;  %s2655_s24 = smov 0  }
   0xd LB: > { %3265 = sst [smem:[#allocation13_spill]] %s2511_s23  ;;  %s3253_s25 = sadd.s32 4294967295, %s2515_s24   ;;  %s2515_s24 = sphi %s2655_s24, %s3283_s24   ;;  %s2511_s23 = sphi %s2653_s23, %s3285_s23   ;;  %s2507_s22 = sphi %s2651_s22, %s3287_s22   ;;  %s2503_s21 = sphi %s2649_s21, %s3286_s21  }
   0xe   : > { %s2054_s26 = sadd.s32 4294967294, %s2515_s24   ;;  %s2672_s27 = sadd.s32 1, %s2515_s24  }
   0xf   : > { %3266 = sst [smem:[#allocation14_spill]] %s2672_s27  ;;  %s40_s28 = sadd.s32 1, %s2511_s23 }
  0x10   : > { %s37_s29 = ssub.s32 %s2515_s24, %s2672_s27  ;;  %p47_p0 = scmp.ne.s32.totalorder %s2511_s23, %s2507_s22 }
  0x11   : > { %p38_p1 = scmp.eq.s32.totalorder %s37_s29, 0  ;;  %p48_p2 = scmp.eq.s32.totalorder %s2515_s24, 0 }
  0x12   : > { %p376_p3 = scmp.eq.s32.totalorder %s3253_s25, 1  ;;  %p381_p4 = scmp.ne.s32.totalorder %s2507_s22, %s2503_s21 }
  0x13   : > { %s2685_s30 = scalar_select %p38_p1, %s2511_s23, %s40_s28  }
  0x14   : > { %p2687_p5 = por %p48_p2, %p47_p0  ;;  %p2691_p6 = por %p376_p3, %p47_p0 }
  0x15   : > { %3267 = sst [smem:[#allocation15_spill]] %s2685_s30  ;;  %p382_p7 = scmp.eq.s32.totalorder %s2054_s26, 1 }
  0x16   : > { %p2056_p9 = scmp.ge.s32.totalorder %s2515_s24, 2 }
  0x17   : > { %p2695_p8 = por %p382_p7, %p381_p4 }
  0x18   : > { %463 = sbr.rel (%p2056_p9) target bundleno = 56 (0x38), region = 68 }
  0x19   : > { %s3270_s18 = scalar_select %p2695_p8, 1, 0 }
  0x1b   : > { %3271 = sst [smem:[#allocation16_spill]] %s3270_s18 }
  0x1f   : > { %466 = sbr.rel (!%p2687_p5) target bundleno = 45 (0x2d), region = 72  ;;  %s468_s19 = sand.u32 (%p2687_p5), 1, %s2511_s23  }
  0x20   : > { %s2058_s20 = sshll.u32 (%p2687_p5), %s2515_s24, 3  ;;  %s2057_s28 = sshll.u32 (%p2687_p5), %s468_s19, 6 }
  0x21   : > { %s3272_s26 = sld [smem:[#allocation17_spill]] (%p2687_p5)  ;;  %s470_s27 = scalar_lea.vmem (%p2687_p5), [#allocation5], %s2057_s28 }
  0x27   : > { %s472_s30 = scalar_lea.vmem %s3272_s26, %s2058_s20 }
  0x28   : > { %v514_v0 = vld [vmem:[%s472_s30] sm:$0xff]  ;;  %v516_v1 = vld [vmem:[%s472_s30 + $0x10] sm:$0xff] }
  0x29   : > { %v518_v2 = vld [vmem:[%s472_s30 + $0x20] sm:$0xff]  ;;  %515 = vst [vmem:[%s470_s27] sm:$0xff] %v514_v0  ;;  %517 = vst [vmem:[%s470_s27 + $0x8] sm:$0xff] %v516_v1  ;;  %v520_v3 = vld [vmem:[%s472_s30 + $0x30] sm:$0xff] }
  0x2a   : > { %519 = vst [vmem:[%s470_s27 + $0x10] sm:$0xff] %v518_v2  ;;  %v522_v4 = vld [vmem:[%s472_s30 + $0x40] sm:$0xff]  ;;  %v524_v5 = vld [vmem:[%s472_s30 + $0x50] sm:$0xff]  ;;  %521 = vst [vmem:[%s470_s27 + $0x18] sm:$0xff] %v520_v3 }
  0x2b   : > { %523 = vst [vmem:[%s470_s27 + $0x20] sm:$0xff] %v522_v4  ;;  %525 = vst [vmem:[%s470_s27 + $0x28] sm:$0xff] %v524_v5  ;;  %v526_v6 = vld [vmem:[%s472_s30 + $0x60] sm:$0xff]  ;;  %v528_v7 = vld [vmem:[%s472_s30 + $0x70] sm:$0xff] }
  0x2c   : > { %527 = vst [vmem:[%s470_s27 + $0x30] sm:$0xff] %v526_v6  ;;  %529 = vst [vmem:[%s470_s27 + $0x38] sm:$0xff] %v528_v7 }
  0x2d PF: > { %535 = sbr.rel (!%p2687_p5) target bundleno = 56 (0x38), region = 110  ;;  %s537_s25 = sand.u32 (%p2687_p5), 1, %s2511_s23  }
  0x2e   : > { %s2060_s19 = sshll.u32 (%p2687_p5), %s2515_s24, 3  ;;  %s2059_s20 = sshll.u32 (%p2687_p5), %s537_s25, 4 }
  0x2f   : > { %s3273_s1 = sld [smem:[#allocation18_spill]] (%p2687_p5)  ;;  %s539_s18 = scalar_lea.vmem (%p2687_p5), [#allocation6], %s2059_s20 }
  0x35   : > { %s541_s26 = scalar_lea.vmem %s3273_s1, %s2060_s19 }
  0x36   : > { %v571_v8 = vld [vmem:[%s541_s26] sm:$0xff]  ;;  %v573_v9 = vld [vmem:[%s541_s26 + $0x10] sm:$0xff] }
  0x37   : > { %572 = vst [vmem:[%s539_s18] sm:$0xff] %v571_v8  ;;  %574 = vst [vmem:[%s539_s18 + $0x8] sm:$0xff] %v573_v9 }
  0x38 PF: > { %p2061_p10 = scmp.ge.s32.totalorder %s2515_s24, 1  ;;  %p579_p11 = scmp.lt.s32.totalorder %s2515_s24, 3 }
  0x3a   : > { %p580_p12 = pnand %p2061_p10, %p579_p11 }
  0x3b   : > { %s2719_s27 = sand.u32 (!%p580_p12), 1, %s2507_s22   ;;  %s3274_s2 = sld [smem:[#allocation19_spill]] (!%p580_p12)  ;;  %v2816_v28 = vld [vmem:[%s3243_s7] ss:$0 sm:$0xff] (!%p580_p12) }
  0x3c   : > { %583 = sbr.rel (%p580_p12) target bundleno = 3987 (0xf93), region = 148  ;;  %s3275_s3 = sld [smem:[#allocation20_spill]] (!%p580_p12)  ;;  %v2821_v29 = vld [vmem:[%s3244_s8] ss:$0 sm:$0xff] (!%p580_p12) }
  0x3d   : > { %s2062_s28 = sshll.u32 (!%p580_p12), %s2719_s27, 6  ;;  %s2063_s29 = sshll.u32 (!%p580_p12), %s2719_s27, 4 }
  0x3e   : > { %s3276_s4 = sld [smem:[#allocation21_spill]] (!%p580_p12)  ;;  %s3277_s5 = sld [smem:[#allocation22_spill]] (!%p580_p12) }
  0x3f   : > { %s3278_s6 = sld [smem:[#allocation23_spill]] (!%p580_p12)  ;;  %s2823_s25 = scalar_lea.vmem (!%p580_p12), [#allocation5], %s2062_s28 }
  0x40   : > { %s2825_s18 = scalar_lea.vmem (!%p580_p12), [#allocation6], %s2063_s29  ;;  %s2827_s19 = scalar_lea.vmem (!%p580_p12), [#allocation7], %s2063_s29 }
  0x41   : > { %v2724_v10 = vld [vmem:[%s3274_s2] sm:$0xff] (!%p580_p12)  ;;  %v2729_v11 = vld [vmem:[%s3274_s2 + $0x8] sm:$0xff] (!%p580_p12)  ;;  %s2829_s20 = scalar_lea.vmem (!%p580_p12), [#allocation9], %s2062_s28  ;;  %s2831_s2 = smov (!%p580_p12), 0  }
  0x42   : > { %v2734_v12 = vld [vmem:[%s3275_s3] sm:$0xf] (!%p580_p12)  ;;  %v2741_v13 = vld [vmem:[%s3275_s3 + $0x4] sm:$0x3] (!%p580_p12) }
  0x44   : > { %v2746_v14 = vld [vmem:[%s3276_s4] sm:$0xf]  ;;  %v2751_v15 = vld [vmem:[%s3276_s4 + $0x4] sm:$0x3]  ;;  %v2766_v18 = vld [vmem:[%s3277_s5 + $0x8] sm:$0xf] }
  0x45   : > { %v2756_v16 = vld [vmem:[%s3277_s5] sm:$0xf]  ;;  %v2761_v17 = vld [vmem:[%s3277_s5 + $0x4] sm:$0xf]  ;;  %v2771_v19 = vld [vmem:[%s3277_s5 + $0xc] sm:$0xf] }
  0x46   : > { %v2776_v20 = vld [vmem:[%s3277_s5 + $0x10] sm:$0xf]  ;;  %v2781_v21 = vld [vmem:[%s3277_s5 + $0x14] sm:$0xf]  ;;  %v2786_v22 = vld [vmem:[%s3278_s6] sm:$0xf] }
  0x47   : > { %v2791_v23 = vld [vmem:[%s3278_s6 + $0x4] sm:$0xf]  ;;  %v2796_v24 = vld [vmem:[%s3278_s6 + $0x8] sm:$0xf]  ;;  %v2801_v25 = vld [vmem:[%s3278_s6 + $0xc] sm:$0xf] }
  0x48   : > { %v2806_v26 = vld [vmem:[%s3278_s6 + $0x10] sm:$0xf]  ;;  %v2811_v27 = vld [vmem:[%s3278_s6 + $0x14] sm:$0xf] }
  0x49 LB: >> { %vm681_vm0 = vcmask 64512   ;;  %s2839_s23 = sshll.u32 %s2519_s2, 3  ;;  %vm790_vm1 = vcmask 1045504   ;;  %v2073_v31 = vcombine.low %v2746_v14, %v2751_v15  ;;  %v2541_v32 = vmov 0.0   ;;  %s2543_s28 = smov 4   ;;  %s2519_s2 = sphi %s2831_s2, %s677_s2  }
  0x4a   : >> { %2172 = vmatprep.mubr.msk.f32.mxu0 %vm681_vm0, %v2724_v10  ;;  %s679_s29 = scalar_lea.vmem %s2823_s25, %s2839_s23 [#allocation5]  ;;  %2175 = vmatprep.subr.bf16.mxu1 %v2541_v32  ;;  %v2070_v33 = vcombine.low %v2734_v12, %v2741_v13  ;;  %vm2542_vm2 = vmmov 0   ;;  %s2544_s1 = smov 8   ;;  %vm771_vm3 = vcmask 31744   ;;  %vm786_vm4 = vcmask 97280  }
  0x4b   : >> { %v680_v30 = vld [vmem:[%s679_s29] sm:$0xff]  ;;  %v849_v34 = vsel %vm790_vm1, %v2073_v31, 0  ;;  %2177 = vmatprep.mubr.msk.bf16.mxu1 %vm2542_vm2, %v2541_v32  ;;  %vm835_vm5 = vcmask 261120   ;;  %vm892_vm6 = vcmask 130048   ;;  %s834_s26 = scalar_lea.vmem [#allocation3], %s2839_s23  ;;  %s891_s30 = scalar_lea.vmem [#allocation4], %s2839_s23 }
  0x4c   : >> { %2170 = vmatprep.subr.mxu0 %v680_v30  ;;  %v792_v35 = vsel %vm790_vm1, %v2070_v33, 0  ;;  %s677_s2 = sadd.s32 1, %s2519_s2  }
  0x4d   : >> { %2171 = vmatpush3.msra.mxu0 %v680_v30  ;;  %2176 = vmatpush3.bf16.msra.mxu1 %v792_v35  ;;  %p674_p13 = scmp.ge.s32.totalorder %s677_s2, 8  }
  0x4e   : >> { %2173 = vmatmul.mubr.msk.f32.vlgmr.msra.gmra.mrb[0].mxu0 %vm681_vm0, %v2729_v11  ;;  %2181 = vmatprep.subr.bf16.mxu0 %v2541_v32  ;;  %v894_v53 = vld [vmem:[%s2825_s18] sm:$0xff] (%p674_p13)   ;;  %s2862_s0 = smov (%p674_p13), 0  }
  0x4f   : >> { %2182 = vmatpush3.bf16.msra.mxu0 %v849_v34  ;;  %2183 = vmatprep.mubr.msk.bf16.mxu0 %vm2542_vm2, %v2541_v32 }
 0x121   : >> { %v2174_v36 = vpop.f32.mrb[0].mxu0 }
 0x122   : >> { %v754_v37 = vpop.f32.mrb[1].mxu0 }
 0x123   : >> { %764 = vrot.lane.b32.xlu0 %v754_v37, %s2543_s28 }
 0x127   : >> { %768 = vrot.lane.b32.xlu0 %v2174_v36, %s2544_s1 }
 0x195   : >> { %v765_v38 = vpop.permute.xlu0 %764 }
 0x196   : >> { %v772_v39 = vsel %vm771_vm3, %v680_v30, %v765_v38 }
 0x199   : >> { %v769_v40 = vpop.permute.xlu0 %768 }
 0x19a   : >> { %v773_v41 = vsel %vm681_vm0, %v772_v39, %v769_v40 }
 0x19b   : >> { %v774_v42 = vpack.c.bf16 %v773_v41, %v773_v41 }
 0x19d   : >> { %2178 = vmatmul.mubr.msk.bf16.vlgmr.msra.gmra.mrb[0].mxu1 %vm786_vm4, %v774_v42  ;;  %2184 = vmatmul.mubr.msk.bf16.vlgmr.msra.gmra.mrb[4].mxu0 %vm786_vm4, %v774_v42 }
 0x26e   : > { %676 = sbr.rel (!%p674_p13) target bundleno = 73 (0x49), region = 263 }
 0x270   : >> { %v828_v43 = vpop.f32.mrb[0].mxu1  ;;  %v885_v44 = vpop.f32.mrb[4].mxu0 }
 0x271   : >> { %v829_v45 = vadd.f32 %v2816_v28, %v828_v43  ;;  %v886_v46 = vadd.f32 %v2821_v29, %v885_v44  ;;  %v2179_v47 = vpop.f32.mrb[1].mxu1  ;;  %v2185_v48 = vpop.f32.mrb[5].mxu0 }
 0x272   : >> { %v831_v49 = vpop.f32.mrb[2].mxu1  ;;  %v888_v50 = vpop.f32.mrb[6].mxu0 }
 0x273   : >> { %836 = vst.msk [vmem:[%s834_s26] sm:$0xff] %vm835_vm5, %v829_v45  ;;  %v2180_v51 = vpop.f32.mrb[3].mxu1  ;;  %v2186_v52 = vpop.f32.mrb[7].mxu0 }
 0x274   : >> { %893 = vst.msk [vmem:[%s891_s30] sm:$0xff] %vm892_vm6, %v886_v46 }
 0x275 LB: >> { %2189 = vmatprep.mubr.msk.f32.mxu1 %vm681_vm0, %v2724_v10  ;;  %2204 = vmatprep.mubr.msk.f32.mxu0 %vm681_vm0, %v2724_v10  ;;  %v2078_v54 = vcombine.low %v2756_v16, %v2761_v17  ;;  %v2545_v55 = vmov 0.0   ;;  %v2079_v56 = vcombine.low %v2766_v18, %v2771_v19  ;;  %v2080_v57 = vcombine.low %v2776_v20, %v2781_v21  ;;  %s2547_s25 = smov 16   ;;  %s2548_s2 = smov 32   ;;  %s2527_s0 = sphi %s2862_s0, %s900_s0   ;;  %v2523_v53 = vphi %v894_v53, %v3279_v53  }
 0x276   : >> { %2187 = vmatprep.subr.mxu1 %v2523_v53  ;;  %vm2546_vm7 = vmmov 0   ;;  %vm1018_vm8 = vcmask 392192   ;;  %s2888_s23 = sshll.u32 %s2527_s0, 3  ;;  %v2085_v14 = vcombine.low %v2786_v22, %v2791_v23  ;;  %v2086_v15 = vcombine.low %v2796_v24, %v2801_v25  ;;  %s2549_s1 = smov 112  }
 0x277   : >> { %2188 = vmatpush3.msra.mxu1 %v2523_v53  ;;  %s998_s29 = scalar_lea.vmem [#allocation3], %s2888_s23  ;;  %v2087_v28 = vcombine.low %v2806_v26, %v2811_v27  ;;  %s1156_s28 = scalar_lea.vmem [#allocation4], %s2888_s23 }
 0x278   : >> { %2190 = vmatmul.mubr.msk.f32.vlgmr.msra.gmra.mrb[0].mxu1 %vm681_vm0, %v2729_v11  ;;  %2192 = vmatprep.subr.bf16.mxu1 %v2545_v55  ;;  %s1237_s26 = scalar_lea.vmem [#allocation2], %s2888_s23  ;;  %s900_s0 = sadd.s32 1, %s2527_s0  }
 0x279   : >> { %2193 = vmatpush3.bf16.msra.mxu1 %v2078_v54  ;;  %2198 = vmatprep.mubr.msk.bf16.mxu1 %vm2546_vm7, %v2545_v55  ;;  %p897_p0 = scmp.ge.s32.totalorder %s900_s0, 8  }
 0x27a   : >> { %2194 = vmatprep.subr.bf16.mxu1 %v2545_v55  ;;  %v999_v1 = vld [vmem:[%s998_s29] sm:$0xff]  ;;  %v2929_v52 = vld [vmem:[%s3245_s9 + $0x8] sm:$0xf] (%p897_p0)  ;;  %v2934_v16 = vld [vmem:[%s3245_s9 + $0xc] sm:$0xf] (%p897_p0) }
 0x27b   : >> { %v1157_v36 = vld [vmem:[%s1156_s28] sm:$0xff]  ;;  %v2939_v17 = vld [vmem:[%s3245_s9 + $0x10] sm:$0xf] (%p897_p0)  ;;  %v2944_v18 = vld [vmem:[%s3245_s9 + $0x14] sm:$0xf] (%p897_p0) }
 0x27c   : > { %v2919_v50 = vld [vmem:[%s3245_s9] sm:$0xf] (%p897_p0)  ;;  %v2924_v51 = vld [vmem:[%s3245_s9 + $0x4] sm:$0xf] (%p897_p0)  ;;  %v2959_v21 = vld [vmem:[%s3246_s10 + $0x8] sm:$0xf] (%p897_p0) }
 0x27d   : >> { %2195 = vmatpush3.bf16.msra.mxu1 %v2079_v56  ;;  %v2949_v19 = vld [vmem:[%s3246_s10] sm:$0xf] (%p897_p0)  ;;  %v2954_v20 = vld [vmem:[%s3246_s10 + $0x4] sm:$0xf] (%p897_p0)  ;;  %v2964_v22 = vld [vmem:[%s3246_s10 + $0xc] sm:$0xf] (%p897_p0) }
 0x27e   : >> { %2196 = vmatprep.subr.bf16.mxu1 %v2545_v55  ;;  %v2969_v23 = vld [vmem:[%s3246_s10 + $0x10] sm:$0xf] (%p897_p0)  ;;  %v2974_v24 = vld [vmem:[%s3246_s10 + $0x14] sm:$0xf] (%p897_p0)  ;;  %v2979_v25 = vld [vmem:[%s3247_s11] sm:$0xf] (%p897_p0) }
 0x27f   : > { %v2984_v26 = vld [vmem:[%s3247_s11 + $0x4] sm:$0xf] (%p897_p0)  ;;  %v2989_v27 = vld [vmem:[%s3247_s11 + $0x8] sm:$0xf] (%p897_p0)  ;;  %v2999_v54 = vld [vmem:[%s3247_s11 + $0x10] sm:$0xf] (%p897_p0) }
 0x280   : > { %v3009_v56 = vld [vmem:[%s3248_s12] sm:$0xf] (%p897_p0) }
 0x281   : >> { %2197 = vmatpush3.bf16.msra.mxu1 %v2080_v57  ;;  %v3014_v57 = vld [vmem:[%s3248_s12 + $0x4] sm:$0xf] (%p897_p0) }
 0x34b   : >> { %v2191_v58 = vpop.f32.mrb[0].mxu1 }
 0x34c   : >> { %v975_v59 = vpop.f32.mrb[1].mxu1 }
 0x34d   : >> { %985 = vrot.lane.b32.xlu0 %v975_v59, %s2547_s25  ;;  %v3024_v59 = vld [vmem:[%s3248_s12 + $0xc] sm:$0xf] (%p897_p0) }
 0x351   : >> { %989 = vrot.lane.b32.xlu0 %v2191_v58, %s2548_s2  ;;  %v3019_v58 = vld [vmem:[%s3248_s12 + $0x8] sm:$0xf] (%p897_p0) }
 0x355   : >> { %1222 = vrot.lane.b32.xlu0 %v2523_v53, %s2547_s25 }
 0x3bf   : >> { %v986_v60 = vpop.permute.xlu0 %985 }
 0x3c0   : >> { %v993_v61 = vsel %vm892_vm6, %v2523_v53, %v986_v60  ;;  %v3029_v60 = vld [vmem:[%s3248_s12 + $0x10] sm:$0xf] (%p897_p0) }
 0x3c3   : >> { %v990_v62 = vpop.permute.xlu0 %989 }
 0x3c4   : >> { %v995_v63 = vsel %vm835_vm5, %v993_v61, %v990_v62  ;;  %v3034_v61 = vld [vmem:[%s3248_s12 + $0x14] sm:$0xf] (%p897_p0)  ;;  %v3039_v62 = vld [vmem:[%s3249_s13] ss:$0 sm:$0xff] (%p897_p0) }
 0x3c5   : >> { %v996_v0 = vpack.c.bf16 %v995_v63, %v995_v63  ;;  %v3044_v63 = vld [vmem:[%s3250_s14] ss:$0 sm:$0xff] (%p897_p0) }
 0x3c7   : >> { %2199 = vmatmul.mubr.msk.bf16.vlgmr.msra.gmra.mrb[4].mxu1 %vm1018_vm8, %v996_v0  ;;  %v1223_v43 = vpop.permute.xlu0 %1222 }
 0x49a   : >> { %v1056_v2 = vpop.f32.mrb[4].mxu1 }
 0x49b   : >> { %v1062_v3 = vadd.f32 %v1056_v2, %v999_v1  ;;  %v2200_v4 = vpop.f32.mrb[5].mxu1 }
 0x49c   : >> { %v1059_v5 = vpop.f32.mrb[6].mxu1 }
 0x49d   : >> { %v2082_v6 = vmul.f32 -1.442695, %v1062_v3  ;;  %v2201_v7 = vpop.f32.mrb[7].mxu1 }
 0x49f   : >> { %2385 = vpow2.f32 %v2082_v6 }
 0x4a9   : >> { %v2386_v8 = vpop.eup %2385 }
 0x4aa   : >> { %v1066_v9 = vadd.f32 1.0, %v2386_v8 }
 0x4ac   : >> { %2387 = vrcp.f32 %v1066_v9 }
 0x4b6   : >> { %v2388_v12 = vpop.eup %2387 }
 0x4b7   : >> { %v1069_v13 = vmul.f32 %v2523_v53, %v2388_v12  ;;  %v1226_v44 = vsub.f32 1.0, %v2388_v12  ;;  %v1225_v46 = vmul.f32 %v2388_v12, %v1223_v43 }
 0x4b9   : >> { %2202 = vmatprep.subr.mxu0 %v1069_v13 }
 0x4ba   : >> { %2203 = vmatpush3.msra.mxu0 %v1069_v13 }
 0x4bb   : >> { %2205 = vmatmul.mubr.msk.f32.vlgmr.msra.gmra.mrb[0].mxu0 %vm681_vm0, %v2729_v11  ;;  %2207 = vmatprep.subr.bf16.mxu0 %v2545_v55 }
 0x4bc   : >> { %2213 = vmatprep.mubr.msk.bf16.mxu0 %vm2546_vm7, %v2545_v55  ;;  %2208 = vmatpush3.bf16.msra.mxu0 %v2085_v14 }
 0x4bd   : >> { %2209 = vmatprep.subr.bf16.mxu0 %v2545_v55 }
 0x4c0   : >> { %2210 = vmatpush3.bf16.msra.mxu0 %v2086_v15 }
 0x4c1   : >> { %2211 = vmatprep.subr.bf16.mxu0 %v2545_v55  ;;  %v3004_v55 = vld [vmem:[%s3247_s11 + $0x14] sm:$0xf] (%p897_p0) }
 0x4c4   : >> { %2212 = vmatpush3.bf16.msra.mxu0 %v2087_v28 }
 0x58e   : >> { %v2206_v29 = vpop.f32.mrb[0].mxu0 }
 0x58f   : >> { %v1136_v30 = vpop.f32.mrb[1].mxu0 }
 0x590   : >> { %1146 = vrot.lane.b32.xlu1 %v1136_v30, %s2547_s25 }
 0x594   : >> { %1150 = vrot.lane.b32.xlu1 %v2206_v29, %s2548_s2  ;;  %s3046_s2 = smov (%p897_p0), 0  }
 0x602   : >> { %v1147_v31 = vpop.permute.xlu1 %1146 }
 0x603   : >> { %v1153_v32 = vsel %vm892_vm6, %v1069_v13, %v1147_v31 }
 0x606   : >> { %v1151_v33 = vpop.permute.xlu1 %1150 }
 0x607   : >> { %v1154_v34 = vsel %vm835_vm5, %v1153_v32, %v1151_v33 }
 0x608   : >> { %v1155_v35 = vpack.c.bf16 %v1154_v34, %v1154_v34 }
 0x60a   : >> { %2214 = vmatmul.mubr.msk.bf16.vlgmr.msra.gmra.mrb[4].mxu0 %vm1018_vm8, %v1155_v35 }
 0x6dd   : >> { %v1213_v37 = vpop.f32.mrb[4].mxu0 }
 0x6de   : >> { %v1219_v38 = vadd.f32 %v1213_v37, %v1157_v36  ;;  %v2215_v39 = vpop.f32.mrb[5].mxu0 }
 0x6df   : >> { %v1216_v40 = vpop.f32.mrb[6].mxu0 }
 0x6e0   : >> { %2389 = vtanh.f32 %v1219_v38  ;;  %v2216_v41 = vpop.f32.mrb[7].mxu0 }
 0x6ea   : >> { %v2390_v42 = vpop.eup %2389 }
 0x6eb   : >> { %1228 = vrot.lane.b32.xlu1 %v2390_v42, %s2547_s25 }
 0x75d   : >> { %v1229_v45 = vpop.permute.xlu1 %1228 }
 0x75e   : >> { %v1231_v47 = vmul.f32 %v1229_v45, %v1226_v44 }
 0x760   : >> { %v1232_v48 = vadd.f32 %v1231_v47, %v1225_v46 }
 0x762   : >> { %1234 = vrot.lane.b32.xlu0 %v1232_v48, %s2549_s1 }
 0x7cf   : > { %899 = sbr.rel (!%p897_p0) target bundleno = 629 (0x275), region = 274 }
 0x7d4   : >> { %v1235_v49 = vpop.permute.xlu0 %1234  }
 0x7d5   : >> { %1238 = vst.msk [vmem:[%s1237_s26] sm:$0xff] %vm892_vm6, %v1235_v49  ;;  %v3279_v53 = vmov %v1235_v49  ;;  %1240 = vst.msk [vmem:[%s2827_s19] sm:$0xff] (%p897_p0), %vm892_vm6, %v1235_v49 }
 0x7d6   : > { %v2994_v53 = vld [vmem:[%s3247_s11 + $0xc] sm:$0xf] }
 0x7d7 LB: >> { %2219 = vmatprep.mubr.msk.f32.mxu0 %vm681_vm0, %v2724_v10  ;;  %s3054_s23 = sshll.u32 %s2531_s2, 3  ;;  %v2093_v1 = vcombine.low %v2919_v50, %v2924_v51  ;;  %v2098_v2 = vcombine.low %v2949_v19, %v2954_v20  ;;  %v2550_v3 = vmov 0.0   ;;  %v2094_v4 = vcombine.low %v2929_v52, %v2934_v16  ;;  %s2552_s28 = smov 16   ;;  %s2531_s2 = sphi %s3046_s2, %s1272_s2  }
 0x7d8   : >> { %s1274_s29 = scalar_lea.vmem [#allocation2], %s3054_s23  ;;  %2222 = vmatprep.subr.bf16.mxu1 %v2550_v3  ;;  %v2099_v5 = vcombine.low %v2959_v21, %v2964_v22  ;;  %v2095_v6 = vcombine.low %v2939_v17, %v2944_v18  ;;  %v2100_v7 = vcombine.low %v2969_v23, %v2974_v24  ;;  %vm2551_vm9 = vmmov 0   ;;  %s2553_s0 = smov 32  }
 0x7d9   : >> { %2223 = vmatpush3.bf16.msra.mxu1 %v2093_v1  ;;  %2228 = vmatprep.mubr.msk.bf16.mxu1 %vm2551_vm9, %v2550_v3  ;;  %s1438_s1 = scalar_lea.vmem [#allocation3], %s3054_s23  ;;  %s1504_s3 = scalar_lea.vmem [#allocation4], %s3054_s23 }
 0x7da   : >> { %2224 = vmatprep.subr.bf16.mxu1 %v2550_v3  ;;  %s1272_s2 = sadd.s32 1, %s2531_s2  }
 0x7db   : >> { %p1269_p1 = scmp.ge.s32.totalorder %s1272_s2, 8  }
 0x7dc   : >> { %v1275_v0 = vld [vmem:[%s1274_s29] sm:$0xff]  ;;  %v2102_v39 = vld [vmem:[%s2825_s18 + $0x8] sm:$0xff] (%p1269_p1)   ;;  %s3087_s26 = smov (%p1269_p1), 0  }
 0x7dd   : >> { %2217 = vmatprep.subr.mxu0 %v1275_v0  ;;  %2225 = vmatpush3.bf16.msra.mxu1 %v2094_v4 }
 0x7de   : >> { %2218 = vmatpush3.msra.mxu0 %v1275_v0  ;;  %2226 = vmatprep.subr.bf16.mxu1 %v2550_v3 }
 0x7df   : >> { %2220 = vmatmul.mubr.msk.f32.vlgmr.msra.gmra.mrb[0].mxu0 %vm681_vm0, %v2729_v11  ;;  %2232 = vmatprep.subr.bf16.mxu0 %v2550_v3 }
 0x7e0   : >> { %2233 = vmatpush3.bf16.msra.mxu0 %v2098_v2  ;;  %2238 = vmatprep.mubr.msk.bf16.mxu0 %vm2551_vm9, %v2550_v3 }
 0x7e1   : >> { %2234 = vmatprep.subr.bf16.mxu0 %v2550_v3  ;;  %2227 = vmatpush3.bf16.msra.mxu1 %v2095_v6 }
 0x7e4   : >> { %2235 = vmatpush3.bf16.msra.mxu0 %v2099_v5 }
 0x7e5   : >> { %2236 = vmatprep.subr.bf16.mxu0 %v2550_v3 }
 0x7e8   : >> { %2237 = vmatpush3.bf16.msra.mxu0 %v2100_v7 }
 0x8b2   : >> { %v2221_v8 = vpop.f32.mrb[0].mxu0 }
 0x8b3   : >> { %v1349_v9 = vpop.f32.mrb[1].mxu0 }
 0x8b4   : >> { %1359 = vrot.lane.b32.xlu0 %v1349_v9, %s2552_s28 }
 0x8b8   : >> { %1363 = vrot.lane.b32.xlu0 %v2221_v8, %s2553_s0 }
 0x926   : >> { %v1360_v12 = vpop.permute.xlu0 %1359 }
 0x927   : >> { %v1366_v13 = vsel %vm892_vm6, %v1275_v0, %v1360_v12 }
 0x92a   : >> { %v1364_v14 = vpop.permute.xlu0 %1363 }
 0x92b   : >> { %v1368_v15 = vsel %vm835_vm5, %v1366_v13, %v1364_v14 }
 0x92c   : >> { %v1369_v28 = vpack.c.bf16 %v1368_v15, %v1368_v15 }
 0x92e   : >> { %2229 = vmatmul.mubr.msk.bf16.vlgmr.msra.gmra.mrb[0].mxu1 %vm1018_vm8, %v1369_v28  ;;  %2239 = vmatmul.mubr.msk.bf16.vlgmr.msra.gmra.mrb[4].mxu0 %vm1018_vm8, %v1369_v28 }
 0x9ff   : > { %1271 = sbr.rel (!%p1269_p1) target bundleno = 2007 (0x7d7), region = 285 }
 0xa01   : >> { %v1432_v29 = vpop.f32.mrb[0].mxu1  ;;  %v1498_v30 = vpop.f32.mrb[4].mxu0 }
 0xa02   : >> { %v1433_v31 = vadd.f32 %v3039_v62, %v1432_v29  ;;  %v1499_v32 = vadd.f32 %v3044_v63, %v1498_v30  ;;  %v2230_v33 = vpop.f32.mrb[1].mxu1  ;;  %v2240_v34 = vpop.f32.mrb[5].mxu0 }
 0xa03   : >> { %v1435_v35 = vpop.f32.mrb[2].mxu1  ;;  %v1501_v36 = vpop.f32.mrb[6].mxu0 }
 0xa04   : >> { %1439 = vst.msk [vmem:[%s1438_s1] sm:$0xff] %vm835_vm5, %v1433_v31  ;;  %v2231_v37 = vpop.f32.mrb[3].mxu1  ;;  %v2241_v38 = vpop.f32.mrb[7].mxu0 }
 0xa05   : >> { %1505 = vst.msk [vmem:[%s1504_s3] sm:$0xff] %vm892_vm6, %v1499_v32 }
 0xa06 LB: >> { %2244 = vmatprep.mubr.msk.f32.mxu1 %vm681_vm0, %v2724_v10  ;;  %2259 = vmatprep.mubr.msk.f32.mxu0 %vm681_vm0, %v2724_v10  ;;  %v2106_v40 = vcombine.low %v2979_v25, %v2984_v26  ;;  %v2554_v41 = vmov 0.0   ;;  %v2107_v42 = vcombine.low %v2989_v27, %v2994_v53  ;;  %v2108_v43 = vcombine.low %v2999_v54, %v3004_v55  ;;  %s2556_s18 = smov 16   ;;  %s2557_s30 = smov 32   ;;  %s2539_s26 = sphi %s3087_s26, %s1513_s26   ;;  %v2535_v39 = vphi %v2102_v39, %v3280_v39  }
 0xa07   : >> { %2242 = vmatprep.subr.mxu1 %v2535_v39  ;;  %vm2555_vm10 = vmmov 0   ;;  %s3113_s25 = sshll.u32 %s2539_s26, 3  ;;  %v2113_v62 = vcombine.low %v3009_v56, %v3014_v57  ;;  %v2114_v63 = vcombine.low %v3019_v58, %v3024_v59  ;;  %v2115_v0 = vcombine.low %v3029_v60, %v3034_v61  ;;  %s2558_s29 = smov 112  }
 0xa08   : >> { %2243 = vmatpush3.msra.mxu1 %v2535_v39  ;;  %s1610_s2 = scalar_lea.vmem [#allocation3], %s3113_s25  ;;  %s1768_s23 = scalar_lea.vmem [#allocation4], %s3113_s25 }
 0xa09   : >> { %2245 = vmatmul.mubr.msk.f32.vlgmr.msra.gmra.mrb[0].mxu1 %vm681_vm0, %v2729_v11  ;;  %2247 = vmatprep.subr.bf16.mxu1 %v2554_v41  ;;  %s1849_s28 = scalar_lea.vmem %s2829_s20, %s3113_s25 [#allocation9]  ;;  %s1513_s26 = sadd.s32 1, %s2539_s26  }
 0xa0a   : >> { %2248 = vmatpush3.bf16.msra.mxu1 %v2106_v40  ;;  %2253 = vmatprep.mubr.msk.bf16.mxu1 %vm2555_vm10, %v2554_v41  ;;  %p1510_p2 = scmp.ge.s32.totalorder %s1513_s26, 8  }
 0xa0b   : >> { %2249 = vmatprep.subr.bf16.mxu1 %v2554_v41  ;;  %v1611_v51 = vld [vmem:[%s1610_s2] sm:$0xff]  ;;  %s3281_s0 = sadd.s32 (%p1510_p2), 4294967295, %s2515_s24   ;;  %s1871_s25 = sshll.u32 (%p1510_p2), %s2827_s19, 4  ;;  %s3153_s25 = int_to_ptr.vmem [resolvable:$true] %s1871_s25 }
 0xa0c   : >> { %v1769_v8 = vld [vmem:[%s1768_s23] sm:$0xff]  ;;  %s3144_s1 = sshll.u32 (%p1510_p2), %s3281_s0, 7  ;;  %s1854_s26 = scalar_lea.sflag (%p1510_p2), [#allocation8], %s2719_s27 }
 0xa0d   : > { %s2397_s2 = scalar_lea.vmem (%p1510_p2), %s3153_s25, 256  ;;  %s2559_s23 = smov (%p1510_p2), [#allocation7]  }
 0xa0e   : >> { %2250 = vmatpush3.bf16.msra.mxu1 %v2107_v42  ;;  %p2398_p3 = scmp.ne.s32.totalorder (%p1510_p2), %s3153_s25, %s2397_s2 }
 0xa0f   : >> { %2251 = vmatprep.subr.bf16.mxu1 %v2554_v41 }
 0xa10   : > { %p2399_p4 = pnand (%p1510_p2), %p2398_p3, %p2691_p6 }
 0xa12   : >> { %2252 = vmatpush3.bf16.msra.mxu1 %v2108_v43  ;;  %p2400_p5 = pneg (%p1510_p2), %p2399_p4 }
 0xadc   : >> { %v2246_v44 = vpop.f32.mrb[0].mxu1 }
 0xadd   : >> { %v1588_v45 = vpop.f32.mrb[1].mxu1 }
 0xade   : >> { %1598 = vrot.lane.b32.xlu0 %v1588_v45, %s2556_s18 }
 0xae2   : >> { %1602 = vrot.lane.b32.xlu0 %v2246_v44, %s2557_s30 }
 0xae6   : >> { %1834 = vrot.lane.b32.xlu0 %v2535_v39, %s2556_s18 }
 0xb50   : >> { %v1599_v46 = vpop.permute.xlu0 %1598 }
 0xb51   : >> { %v1605_v47 = vsel %vm892_vm6, %v2535_v39, %v1599_v46 }
 0xb54   : >> { %v1603_v48 = vpop.permute.xlu0 %1602 }
 0xb55   : >> { %v1607_v49 = vsel %vm835_vm5, %v1605_v47, %v1603_v48 }
 0xb56   : >> { %v1608_v50 = vpack.c.bf16 %v1607_v49, %v1607_v49 }
 0xb58   : >> { %2254 = vmatmul.mubr.msk.bf16.vlgmr.msra.gmra.mrb[4].mxu1 %vm1018_vm8, %v1608_v50  ;;  %v1835_v29 = vpop.permute.xlu0 %1834 }
 0xc2b   : >> { %v1668_v52 = vpop.f32.mrb[4].mxu1 }
 0xc2c   : >> { %v1674_v16 = vadd.f32 %v1668_v52, %v1611_v51  ;;  %v2255_v17 = vpop.f32.mrb[5].mxu1 }
 0xc2d   : >> { %v1671_v18 = vpop.f32.mrb[6].mxu1 }
 0xc2e   : >> { %v2110_v19 = vmul.f32 -1.442695, %v1674_v16  ;;  %v2256_v20 = vpop.f32.mrb[7].mxu1 }
 0xc30   : >> { %2391 = vpow2.f32 %v2110_v19 }
 0xc3a   : >> { %v2392_v21 = vpop.eup %2391 }
 0xc3b   : >> { %v1678_v22 = vadd.f32 1.0, %v2392_v21 }
 0xc3d   : >> { %2393 = vrcp.f32 %v1678_v22 }
 0xc47   : >> { %v2394_v23 = vpop.eup %2393 }
 0xc48   : >> { %v1681_v24 = vmul.f32 %v2535_v39, %v2394_v23  ;;  %v1838_v30 = vsub.f32 1.0, %v2394_v23  ;;  %v1837_v32 = vmul.f32 %v2394_v23, %v1835_v29 }
 0xc4a   : >> { %2257 = vmatprep.subr.mxu0 %v1681_v24 }
 0xc4b   : >> { %2258 = vmatpush3.msra.mxu0 %v1681_v24 }
 0xc4c   : >> { %2260 = vmatmul.mubr.msk.f32.vlgmr.msra.gmra.mrb[0].mxu0 %vm681_vm0, %v2729_v11  ;;  %2262 = vmatprep.subr.bf16.mxu0 %v2554_v41 }
 0xc4d   : >> { %2268 = vmatprep.mubr.msk.bf16.mxu0 %vm2555_vm10, %v2554_v41  ;;  %2263 = vmatpush3.bf16.msra.mxu0 %v2113_v62 }
 0xc4e   : >> { %2264 = vmatprep.subr.bf16.mxu0 %v2554_v41 }
 0xc51   : >> { %2265 = vmatpush3.bf16.msra.mxu0 %v2114_v63 }
 0xc52   : >> { %2266 = vmatprep.subr.bf16.mxu0 %v2554_v41 }
 0xc55   : >> { %2267 = vmatpush3.bf16.msra.mxu0 %v2115_v0 }
 0xd1f   : >> { %v2261_v1 = vpop.f32.mrb[0].mxu0 }
 0xd20   : >> { %v1748_v2 = vpop.f32.mrb[1].mxu0 }
 0xd21   : >> { %1758 = vrot.lane.b32.xlu1 %v1748_v2, %s2556_s18 }
 0xd25   : >> { %1762 = vrot.lane.b32.xlu1 %v2261_v1, %s2557_s30  ;;  %s3150_s30 = scalar_lea.hbm (%p1510_p2), %s3251_s15, %s3144_s1 }
 0xd93   : >> { %v1759_v3 = vpop.permute.xlu1 %1758 }
 0xd94   : >> { %v1765_v4 = vsel %vm892_vm6, %v1681_v24, %v1759_v3 }
 0xd97   : >> { %v1763_v5 = vpop.permute.xlu1 %1762 }
 0xd98   : >> { %v1766_v6 = vsel %vm835_vm5, %v1765_v4, %v1763_v5 }
 0xd99   : >> { %v1767_v7 = vpack.c.bf16 %v1766_v6, %v1766_v6 }
 0xd9b   : >> { %2269 = vmatmul.mubr.msk.bf16.vlgmr.msra.gmra.mrb[4].mxu0 %vm1018_vm8, %v1767_v7 }
 0xe6e   : >> { %v1825_v9 = vpop.f32.mrb[4].mxu0 }
 0xe6f   : >> { %v1831_v12 = vadd.f32 %v1825_v9, %v1769_v8  ;;  %v2270_v13 = vpop.f32.mrb[5].mxu0 }
 0xe70   : >> { %v1828_v14 = vpop.f32.mrb[6].mxu0 }
 0xe71   : >> { %2395 = vtanh.f32 %v1831_v12  ;;  %v2271_v15 = vpop.f32.mrb[7].mxu0 }
 0xe7b   : >> { %v2396_v28 = vpop.eup %2395 }
 0xe7c   : >> { %1840 = vrot.lane.b32.xlu1 %v2396_v28, %s2556_s18 }
 0xeee   : >> { %v1841_v31 = vpop.permute.xlu1 %1840 }
 0xeef   : >> { %v1843_v33 = vmul.f32 %v1841_v31, %v1838_v30 }
 0xef1   : >> { %v1844_v34 = vadd.f32 %v1843_v33, %v1837_v32 }
 0xef3   : >> { %1846 = vrot.lane.b32.xlu0 %v1844_v34, %s2558_s29  ;;  %s2401_s29 = sshll.u32 (%p1510_p2), %s2559_s23, 4  ;;  %s2402_s29 = int_to_ptr.vmem [resolvable:$false] %s2401_s29 }
 0xef4   : > { %p2404_p7 = scmp.lt.s32.totalorder (%p1510_p2), %s3153_s25, %s2402_s29 }
 0xf60   : > { %1512 = sbr.rel (!%p1510_p2) target bundleno = 2566 (0xa06), region = 296 }
 0xf65   : >> { %v1847_v35 = vpop.permute.xlu0 %1846  }
 0xf66   : >> { %1850 = vst.msk [vmem:[%s1849_s28] sm:$0xff] %vm892_vm6, %v1847_v35  ;;  %v3280_v39 = vmov %v1847_v35  ;;  %2117 = vst.msk [vmem:[%s2827_s19 + $0x8] sm:$0xff] (%p1510_p2), %vm892_vm6, %v1847_v35  ;;  %s2403_s28 = scalar_lea.vmem (%p1510_p2), %s2402_s29, 512 }
 0xf67   : > { %p2405_p10 = scmp.lt.s32.totalorder %s2403_s28, %s2397_s2 }
 0xf69   : > { %p2406_p11 = por %p2405_p10, %p2404_p7 }
 0xf6b   : > { %p2407_p12 = pnand %p2406_p11, %p2400_p5 }
 0xf6d   : > { %2410 = shalt.err (!%p2407_p12)
}
 0xf6e   : > { %s2411_s19 = scalar_lea.hbm %s3150_s30, 256  ;;  %s2415_s18 = scalar_lea.hbm %s3251_s15, 512 }
 0xf6f   : > { %p2412_p13 = scmp.ne.s32.totalorder %s3150_s30, %s2411_s19  ;;  %p2416_p2 = scmp.lt.u32.totalorder %s3150_s30, %s3251_s15 }
 0xf70   : > { %p2417_p3 = scmp.lt.u32.totalorder %s2415_s18, %s2411_s19  ;;  %p2419_p5 = scmp.lt.u32.totalorder %s2411_s19, %s3150_s30 }
 0xf71   : > { %p2413_p0 = pnand %p2412_p13, %p2691_p6 }
 0xf72   : > { %p2418_p4 = por %p2417_p3, %p2416_p2 }
 0xf73   : > { %p2414_p1 = pneg %p2413_p0 }
 0xf74   : > { %p2420_p7 = por %p2419_p5, %p2418_p4 }
 0xf76   : > { %p2421_p10 = pnand %p2420_p7, %p2414_p1 }
 0xf78   : > { %2424 = shalt.err (!%p2421_p10)
}
 0xf79   : > { %s2560_s2 = smov 128   ;;  %s2561_s28 = smov 256  }
 0xf7a   : > { %s2562_s0 = smov 8   ;;  %s3186_s18 = scalar_lea.hbm %s3252_s16, %s3144_s1 }
 0xf7b   : > { %2272 = dma.vmem_to_hbm [thread:$0]  (%p2691_p6), %s3153_s25, 256, %s3150_s30, %s1854_s26, %s2560_s2, %s2561_s28, %s2562_s0  }
 0xf7c   : > { %s1886_s23 = sshll.u32 %s2829_s20, 4  ;;  %s1859_s29 = scalar_lea.sflag [#allocation10], %s2719_s27  ;;  %s3189_s23 = int_to_ptr.vmem [resolvable:$true] %s1886_s23 }
 0xf7d   : > { %s2425_s4 = scalar_lea.vmem %s3189_s23, 1024  ;;  %s2563_s5 = smov [#allocation9]  }
 0xf7e   : > { %p2426_p11 = scmp.ne.s32.totalorder %s3189_s23, %s2425_s4  ;;  %s2429_s6 = sshll.u32 %s2563_s5, 4  ;;  %s2430_s6 = int_to_ptr.vmem [resolvable:$false] %s2429_s6 }
 0xf7f   : > { %s2431_s30 = scalar_lea.vmem %s2430_s6, 2048  ;;  %p2432_p0 = scmp.lt.s32.totalorder %s3189_s23, %s2430_s6 }
 0xf80   : > { %p2427_p12 = pnand %p2426_p11, %p2691_p6  ;;  %p2433_p1 = scmp.lt.s32.totalorder %s2431_s30, %s2425_s4 }
 0xf82   : > { %p2428_p13 = pneg %p2427_p12  ;;  %p2434_p2 = por %p2433_p1, %p2432_p0 }
 0xf84   : > { %p2435_p3 = pnand %p2434_p2, %p2428_p13 }
 0xf86   : > { %2438 = shalt.err (!%p2435_p3)
}
 0xf87   : > { %s2439_s20 = scalar_lea.hbm %s3186_s18, 1024  ;;  %s2443_s5 = scalar_lea.hbm %s3252_s16, 2048 }
 0xf88   : > { %p2440_p4 = scmp.ne.s32.totalorder %s3186_s18, %s2439_s20  ;;  %p2444_p10 = scmp.lt.u32.totalorder %s3186_s18, %s3252_s16 }
 0xf89   : > { %p2445_p11 = scmp.lt.u32.totalorder %s2443_s5, %s2439_s20  ;;  %p2447_p13 = scmp.lt.u32.totalorder %s2439_s20, %s3186_s18 }
 0xf8a   : > { %p2441_p5 = pnand %p2440_p4, %p2691_p6 }
 0xf8b   : > { %p2446_p12 = por %p2445_p11, %p2444_p10 }
 0xf8c   : > { %p2442_p7 = pneg %p2441_p5 }
 0xf8d   : > { %p2448_p0 = por %p2447_p13, %p2446_p12 }
 0xf8f   : > { %p2449_p1 = pnand %p2448_p0, %p2442_p7 }
 0xf91   : > { %2452 = shalt.err (!%p2449_p1)
}
 0xf92   : > { %2273 = dma.vmem_to_hbm [thread:$0]  (%p2691_p6), %s3189_s23, 1024, %s3186_s18, %s1859_s29, %s2560_s2, %s2561_s28, %s2562_s0  }
 0xf93 PF: > { %s1901_s19 = sand.u32 1, %s2503_s21   ;;  %p2277_p2 = pnand %p2056_p9, %p2695_p8 }
 0xf94   : > { %s1902_s3 = scalar_lea.sflag [#allocation8], %s1901_s19 }
 0xf95   : > { %2494 = dma.done.wait (!%p2277_p2), %s1902_s3, 256  }
 0xf96   : > { %2496 = vsyncadd (!%p2277_p2), %s1902_s3, 4294967040  ;;  %s1911_s17 = scalar_lea.sflag [#allocation10], %s1901_s19 }
 0xf97   : > { %2498 = dma.done.wait (!%p2277_p2), %s1911_s17, 1024  }
 0xf98   : > { %2500 = vsyncadd (!%p2277_p2), %s1911_s17, 4294966272  ;;  %s3283_s24 = sld [smem:[#allocation14_spill]]  ;;  %s3284_s27 = sld [smem:[#allocation13_spill]] }
 0xf99   : > { %s3285_s23 = sld [smem:[#allocation15_spill]]  ;;  %s3286_s21 = smov %s2507_s22 }
 0xf9e   : > { %p30_p6 = scmp.ge.s32.totalorder %s3283_s24, 4   ;;  %s3287_s22 = smov %s3284_s27 }
 0xfa0   :  { %32 = sbr.rel (!%p30_p6) target bundleno = 13 (0xd), region = 307 }
 0xfa7   :  { %1916 = vsyncpa [#allocation8], 1 }
 0xfa8   :  { %1918 = vsyncpa [#allocation8 + $0x1], 1 }
 0xfa9   :  { %1919 = vsyncpa [#allocation10], 1 }
 0xfaa   :  { %1921 = vsyncpa [#allocation10 + $0x1], 1 }

</bundles_post_ra>
